<compile_context>
chip_gen: v6e
topology: v6e:2x2x1
jax: 0.10.0
libtpu: 0.0.40
codegen_flags: <defaults>
</compile_context>

<pallas_src>
import functools

import jax
import jax.numpy as jnp
import numpy as np
from jax import lax
from jax.experimental import pallas as pl
from jax.experimental.pallas import tpu as pltpu


# ---------------------------------------------------------------------------
# Fused kernel
# ---------------------------------------------------------------------------

def _stage(a_bf16, p_ref, wb_ref, br_ref):
    """One Conv3x3(pad=1)+BN(eval)+ReLU+MaxPool2x2 stage on VMEM values.

    a_bf16 : (H, W*Cin)       bf16, natural row order, lanes ordered (w, cin).
    p_ref  : (4*Ho, H)        bf16 one-hot pack matrix: zero-padded rows split
                              into parity groups [xe0|xo0|xe1|xo1] so the 3
                              conv dots read contiguous 2*Ho-row windows.
    wb_ref : (3, W*Cin, W*Cout) bf16 block-banded folded conv+BN weights,
                              output columns ordered (w_parity, wo, cout);
                              width padding handled by omitted band rows.
    br_ref : (1, W*Cout)      f32 folded bias, same column order.
    returns (Ho, Wo*Cout)     bf16, natural rows, lanes ordered (wo, cout).
    """
    f32 = jnp.float32
    H = a_bf16.shape[0]
    Ho = H // 2
    half = wb_ref.shape[2] // 2

    # Height zero-pad + parity split via a tiny one-hot matmul (exact for
    # bf16 values, avoids strided sublane slicing / concat relayouts).
    xp = jnp.dot(p_ref[...], a_bf16,
                 preferred_element_type=f32).astype(jnp.bfloat16)  # (4Ho, K)

    # 3 dots instead of 6: each dy-plane multiplies a contiguous 2*Ho-row
    # window; result rows are [even conv rows ; odd conv rows].
    s = (jnp.dot(xp[0:2 * Ho], wb_ref[0], preferred_element_type=f32)
         + jnp.dot(xp[Ho:3 * Ho], wb_ref[1], preferred_element_type=f32)
         + jnp.dot(xp[2 * Ho:4 * Ho], wb_ref[2], preferred_element_type=f32))

    act = jnp.maximum(s + br_ref[...], 0.0)                 # BN folded in
    hmax = jnp.maximum(act[:Ho], act[Ho:])                  # 2x2 pool: height
    pooled = jnp.maximum(hmax[:, :half], hmax[:, half:])    # 2x2 pool: width
    return pooled.astype(jnp.bfloat16)


def _fused_kernel(x_ref,
                  p1_ref, wb1_ref, br1_ref,
                  p2_ref, wb2_ref, br2_ref,
                  p3_ref, wb3_ref, br3_ref,
                  fw1_ref, fb1_ref, fw2_ref, fb2_ref,
                  o_ref):
    """Entire LightweightCNN forward for one image (one grid step)."""
    f32 = jnp.float32

    a = x_ref[0].astype(jnp.bfloat16)            # (16, 48)  image, (w,c) lanes
    a = _stage(a, p1_ref, wb1_ref, br1_ref)      # (8, 128)
    a = _stage(a, p2_ref, wb2_ref, br2_ref)      # (4, 128)
    a = _stage(a, p3_ref, wb3_ref, br3_ref)      # (2, 128)

    # AdaptiveAvgPool2d((1,1)): mean over Ho rows and Wo lane blocks.
    C = fw1_ref.shape[0]                         # 64
    Ho3, L = a.shape
    Wo3 = L // C
    rsum = jnp.sum(a.astype(f32), axis=0, keepdims=True)    # (1, L)
    gap = rsum[:, :C]
    for wo in range(1, Wo3):                     # static, Wo3 == 2
        gap = gap + rsum[:, wo * C:(wo + 1) * C]
    gap = gap * (1.0 / float(Ho3 * Wo3))

    # Dropout(0.3) layers are identity in eval mode.
    h = jnp.maximum(
        jnp.dot(gap, fw1_ref[...], preferred_element_type=f32) + fb1_ref[...],
        0.0)
    logits = (jnp.dot(h, fw2_ref[...], preferred_element_type=f32)
              + fb2_ref[...])                    # (1, 128) lane-dense (padded)
    o_ref[0] = logits


# ---------------------------------------------------------------------------
# Host-side weight preparation (done once)
# ---------------------------------------------------------------------------

def fold_bn(w_conv, b_conv, gamma, beta, mean, var, eps=1e-5):
    """Fold eval-mode BatchNorm into conv weight/bias (PyTorch OIHW layout)."""
    scale = gamma / np.sqrt(var + eps)
    w = w_conv * scale[:, None, None, None]
    b = scale * (b_conv - mean) + beta
    return w.astype(np.float32), b.astype(np.float32)


def build_banded_weights(w_folded, b_folded, W, dtype=jnp.bfloat16):
    """3x3 conv (pad=1) as 3 block-banded matmul operands.

    Rows indexed (w_in, cin) in natural order (no width-pad rows: padded taps
    are simply omitted).  Output columns ordered (w_parity, wo, cout) so the
    width max-pool is a 128-aligned lane half-split.
    """
    Cout, Cin, KH, KW = w_folded.shape
    assert KH == 3 and KW == 3 and W % 2 == 0
    Wo = W // 2
    M = np.zeros((3, W * Cin, W * Cout), np.float32)
    wt = np.asarray(w_folded, np.float32)
    for dy in range(3):
        for w_out in range(W):
            p, wo = w_out % 2, w_out // 2
            col0 = p * (Wo * Cout) + wo * Cout
            for dx in range(3):
                w_in = w_out + dx - 1
                if 0 <= w_in < W:
                    row0 = w_in * Cin
                    M[dy, row0:row0 + Cin, col0:col0 + Cout] += wt[:, :, dy, dx].T
    b_row = np.tile(np.asarray(b_folded, np.float32), W)[None, :]
    return jnp.asarray(M, dtype), jnp.asarray(b_row, jnp.float32)


def build_pack_matrix(H, dtype=jnp.bfloat16):
    """One-hot (4*Ho, H) matrix: zero-padded rows grouped [xe0|xo0|xe1|xo1].

    Group g, slot r selects padded row j = g + 2r, whose content is input row
    j-1 (zero if out of range).  The three conv LHS windows [xe0;xo0],
    [xo0;xe1], [xe1;xo1] are then contiguous 2*Ho-row slices.
    """
    Ho = H // 2
    P = np.zeros((4 * Ho, H), np.float32)
    for g in range(4):
        for r in range(Ho):
            src = g + 2 * r - 1
            if 0 <= src < H:
                P[g * Ho + r, src] = 1.0
    return jnp.asarray(P, dtype)


def init_params(key, num_classes, height, width):
    spec = [(3, 16), (16, 32), (32, 64)]
    keys = jax.random.split(key, len(spec) + 1)
    params = {}
    ref_convs = []
    W, H = width, height
    for i, (cin, cout) in enumerate(spec):
        kw, kb = jax.random.split(keys[i])
        bound = 1.0 / np.sqrt(cin * 9)
        w = jax.random.uniform(kw, (cout, cin, 3, 3), jnp.float32, -bound, bound)
        b = jax.random.uniform(kb, (cout,), jnp.float32, -bound, bound)
        # Eval-mode BatchNorm with fresh PyTorch-default stats:
        # gamma=1, beta=0, running_mean=0, running_var=1, eps=1e-5.
        gamma = np.ones((cout,), np.float32)
        beta = np.zeros((cout,), np.float32)
        mean = np.zeros((cout,), np.float32)
        var = np.ones((cout,), np.float32)
        w_f, b_f = fold_bn(np.asarray(w), np.asarray(b), gamma, beta, mean, var)
        wb, br = build_banded_weights(w_f, b_f, W)
        params[f"wb{i + 1}"] = wb
        params[f"br{i + 1}"] = br
        params[f"p{i + 1}"] = build_pack_matrix(H)
        # Reference copy (HWIO), rounded to bf16 exactly like the kernel's.
        w_hwio = jnp.asarray(np.transpose(w_f, (2, 3, 1, 0)),
                             jnp.bfloat16).astype(jnp.float32)
        ref_convs.append((w_hwio, jnp.asarray(b_f, jnp.float32)))
        W //= 2
        H //= 2

    k1, k2, k3, k4 = jax.random.split(keys[len(spec)], 4)

    def linear_init(kw_, kb_, fin, fout):
        bound = 1.0 / np.sqrt(fin)
        wt = jax.random.uniform(kw_, (fin, fout), jnp.float32, -bound, bound)
        bb = jax.random.uniform(kb_, (1, fout), jnp.float32, -bound, bound)
        return wt, bb

    w1, b1 = linear_init(k1, k2, 64, 32)
    w2, b2 = linear_init(k3, k4, 32, num_classes)
    # Lane-dense logits: pad the final linear to 128 output columns.
    w2p = jnp.zeros((32, 128), jnp.float32).at[:, :num_classes].set(w2)
    b2p = jnp.zeros((1, 128), jnp.float32).at[:, :num_classes].set(b2)
    params.update(fw1=w1, fb1=b1, fw2=w2p, fb2=b2p)
    ref_params = dict(convs=ref_convs, w1=w1, b1=b1, w2=w2, b2=b2)
    return params, ref_params


# ---------------------------------------------------------------------------
# Full forward pass (single pallas_call)
# ---------------------------------------------------------------------------

@functools.partial(jax.jit, static_argnames=("num_classes",))
def lightweight_cnn_forward(params, x_nchw, *, num_classes):
    N, Cin, H, W = x_nchw.shape
    x = jnp.transpose(x_nchw, (0, 2, 3, 1)).reshape(N, H, W * Cin)  # (N,H,W*C)

    weight_args = (params["p1"], params["wb1"], params["br1"],
                   params["p2"], params["wb2"], params["br2"],
                   params["p3"], params["wb3"], params["br3"],
                   params["fw1"], params["fb1"], params["fw2"], params["fb2"])

    def const_spec(a):
        zeros = (0,) * a.ndim
        return pl.BlockSpec(a.shape, lambda n, _z=zeros: _z)   # VMEM resident

    out = pl.pallas_call(
        _fused_kernel,
        out_shape=jax.ShapeDtypeStruct((N, 1, 128), jnp.float32),
        grid=(N,),
        in_specs=[pl.BlockSpec((1, H, W * Cin), lambda n: (n, 0, 0))]
                 + [const_spec(a) for a in weight_args],
        out_specs=pl.BlockSpec((1, 1, 128), lambda n: (n, 0, 0)),
        compiler_params=pltpu.CompilerParams(
            dimension_semantics=("parallel",)),     # v7x: shard over 2 TCs
    )(x, *weight_args)
    return out.reshape(N, 128)[:, :num_classes]


# Pure-JAX reference (same bf16 rounding points as the kernel).
def reference_forward(ref_params, x_nchw):
    x = jnp.transpose(x_nchw, (0, 2, 3, 1)).astype(jnp.float32)
    x = x.astype(jnp.bfloat16).astype(jnp.float32)
    for w_hwio, b in ref_params["convs"]:
        y = lax.conv_general_dilated(
            x, w_hwio, window_strides=(1, 1), padding=((1, 1), (1, 1)),
            dimension_numbers=("NHWC", "HWIO", "NHWC"),
            precision=lax.Precision.HIGHEST)
        y = jnp.maximum(y + b, 0.0)
        N, H, W, C = y.shape
        y = y.reshape(N, H // 2, 2, W // 2, 2, C).max(axis=(2, 4))
        x = y.astype(jnp.bfloat16).astype(jnp.float32)
    gap = x.mean(axis=(1, 2))
    h = jnp.maximum(
        jnp.dot(gap, ref_params["w1"], precision=lax.Precision.HIGHEST)
        + ref_params["b1"], 0.0)
    return (jnp.dot(h, ref_params["w2"], precision=lax.Precision.HIGHEST)
            + ref_params["b2"])


if __name__ == "__main__":
    key = jax.random.PRNGKey(0)
    k_x, k_p = jax.random.split(key)
    num_classes = 10
    x = jax.random.normal(k_x, (2, 3, 16, 16), jnp.float32)   # NCHW like PyTorch

    params, ref_params = init_params(k_p, num_classes=num_classes,
                                     height=16, width=16)

    logits = jax.block_until_ready(
        lightweight_cnn_forward(params, x, num_classes=num_classes))
    ref = jax.block_until_ready(reference_forward(ref_params, x))

    np.testing.assert_allclose(np.asarray(logits), np.asarray(ref),
                               rtol=5e-2, atol=5e-2)
    assert logits.shape == (2, num_classes)
    print("KERNEL_OK")
</pallas_src>

<mosaic_0001>
module attributes {stable_mosaic.version = 11 : i64} {
  func.func @_fused_kernel(%arg0: i32, %arg1: memref<1x16x48xf32, #tpu.memory_space<vmem>>, %arg2: memref<32x16xbf16, #tpu.memory_space<vmem>>, %arg3: memref<3x48x256xbf16, #tpu.memory_space<vmem>>, %arg4: memref<1x256xf32, #tpu.memory_space<vmem>>, %arg5: memref<16x8xbf16, #tpu.memory_space<vmem>>, %arg6: memref<3x128x256xbf16, #tpu.memory_space<vmem>>, %arg7: memref<1x256xf32, #tpu.memory_space<vmem>>, %arg8: memref<8x4xbf16, #tpu.memory_space<vmem>>, %arg9: memref<3x128x256xbf16, #tpu.memory_space<vmem>>, %arg10: memref<1x256xf32, #tpu.memory_space<vmem>>, %arg11: memref<64x32xf32, #tpu.memory_space<vmem>>, %arg12: memref<1x32xf32, #tpu.memory_space<vmem>>, %arg13: memref<32x128xf32, #tpu.memory_space<vmem>>, %arg14: memref<1x128xf32, #tpu.memory_space<vmem>>, %arg15: memref<1x1x128xf32, #tpu.memory_space<vmem>>) attributes {dimension_semantics = [#tpu.dimension_semantics<parallel>], iteration_bounds = array<i64: 2>, scalar_prefetch = 0 : i64, scratch_operands = 0 : i64, tpu.core_type = #tpu.core_type<tc>, window_params = [{transform_indices = @transform_0, window_bounds = array<i64: 1, 16, 48>}, {pipeline_mode = #tpu.pipeline_mode<synchronous>, transform_indices = @transform_1, window_bounds = array<i64: 32, 16>}, {pipeline_mode = #tpu.pipeline_mode<synchronous>, transform_indices = @transform_2, window_bounds = array<i64: 3, 48, 256>}, {pipeline_mode = #tpu.pipeline_mode<synchronous>, transform_indices = @transform_3, window_bounds = array<i64: 1, 256>}, {pipeline_mode = #tpu.pipeline_mode<synchronous>, transform_indices = @transform_4, window_bounds = array<i64: 16, 8>}, {pipeline_mode = #tpu.pipeline_mode<synchronous>, transform_indices = @transform_5, window_bounds = array<i64: 3, 128, 256>}, {pipeline_mode = #tpu.pipeline_mode<synchronous>, transform_indices = @transform_6, window_bounds = array<i64: 1, 256>}, {pipeline_mode = #tpu.pipeline_mode<synchronous>, transform_indices = @transform_7, window_bounds = array<i64: 8, 4>}, {pipeline_mode = #tpu.pipeline_mode<synchronous>, transform_indices = @transform_8, window_bounds = array<i64: 3, 128, 256>}, {pipeline_mode = #tpu.pipeline_mode<synchronous>, transform_indices = @transform_9, window_bounds = array<i64: 1, 256>}, {pipeline_mode = #tpu.pipeline_mode<synchronous>, transform_indices = @transform_10, window_bounds = array<i64: 64, 32>}, {pipeline_mode = #tpu.pipeline_mode<synchronous>, transform_indices = @transform_11, window_bounds = array<i64: 1, 32>}, {pipeline_mode = #tpu.pipeline_mode<synchronous>, transform_indices = @transform_12, window_bounds = array<i64: 32, 128>}, {pipeline_mode = #tpu.pipeline_mode<synchronous>, transform_indices = @transform_13, window_bounds = array<i64: 1, 128>}, {transform_indices = @transform_14, window_bounds = array<i64: 1, 1, 128>}]} {
    %c0 = arith.constant 0 : index
    %c0_0 = arith.constant 0 : index
    %c0_1 = arith.constant 0 : index
    %0 = vector.load %arg1[%c0, %c0_0, %c0_1] : memref<1x16x48xf32, #tpu.memory_space<vmem>>, vector<1x16x48xf32>
    %1 = vector.shape_cast %0 : vector<1x16x48xf32> to vector<16x48xf32>
    %2 = arith.truncf %1 : vector<16x48xf32> to vector<16x48xbf16>
    %c0_2 = arith.constant 0 : index
    %c0_3 = arith.constant 0 : index
    %3 = vector.load %arg2[%c0_2, %c0_3] : memref<32x16xbf16, #tpu.memory_space<vmem>>, vector<32x16xbf16>
    %cst = arith.constant dense<0.000000e+00> : vector<32x48xf32>
    %4 = tpu.matmul %3, %2, %cst {dimension_numbers = #tpu.dot_dimension_numbers<[1], [0], [0], [1], [0, 0, 1, 1], [], []>} : vector<32x16xbf16>, vector<16x48xbf16>, vector<32x48xf32> -> vector<32x48xf32>
    %5 = arith.truncf %4 : vector<32x48xf32> to vector<32x48xbf16>
    %6 = vector.extract_strided_slice %5 {offsets = [0, 0], sizes = [16, 48], strides = [1, 1]} : vector<32x48xbf16> to vector<16x48xbf16>
    %c0_4 = arith.constant 0 : index
    %c0_5 = arith.constant 0 : index
    %c0_6 = arith.constant 0 : index
    %7 = vector.load %arg3[%c0_4, %c0_5, %c0_6] : memref<3x48x256xbf16, #tpu.memory_space<vmem>>, vector<1x48x256xbf16>
    %8 = vector.shape_cast %7 : vector<1x48x256xbf16> to vector<48x256xbf16>
    %cst_7 = arith.constant dense<0.000000e+00> : vector<16x256xf32>
    %9 = tpu.matmul %6, %8, %cst_7 {dimension_numbers = #tpu.dot_dimension_numbers<[1], [0], [0], [1], [0, 0, 1, 1], [], []>} : vector<16x48xbf16>, vector<48x256xbf16>, vector<16x256xf32> -> vector<16x256xf32>
    %10 = vector.extract_strided_slice %5 {offsets = [8, 0], sizes = [16, 48], strides = [1, 1]} : vector<32x48xbf16> to vector<16x48xbf16>
    %c1 = arith.constant 1 : index
    %c0_8 = arith.constant 0 : index
    %c0_9 = arith.constant 0 : index
    %11 = vector.load %arg3[%c1, %c0_8, %c0_9] : memref<3x48x256xbf16, #tpu.memory_space<vmem>>, vector<1x48x256xbf16>
    %12 = vector.shape_cast %11 : vector<1x48x256xbf16> to vector<48x256xbf16>
    %cst_10 = arith.constant dense<0.000000e+00> : vector<16x256xf32>
    %13 = tpu.matmul %10, %12, %cst_10 {dimension_numbers = #tpu.dot_dimension_numbers<[1], [0], [0], [1], [0, 0, 1, 1], [], []>} : vector<16x48xbf16>, vector<48x256xbf16>, vector<16x256xf32> -> vector<16x256xf32>
    %14 = arith.addf %9, %13 : vector<16x256xf32>
    %15 = vector.extract_strided_slice %5 {offsets = [16, 0], sizes = [16, 48], strides = [1, 1]} : vector<32x48xbf16> to vector<16x48xbf16>
    %c2 = arith.constant 2 : index
    %c0_11 = arith.constant 0 : index
    %c0_12 = arith.constant 0 : index
    %16 = vector.load %arg3[%c2, %c0_11, %c0_12] : memref<3x48x256xbf16, #tpu.memory_space<vmem>>, vector<1x48x256xbf16>
    %17 = vector.shape_cast %16 : vector<1x48x256xbf16> to vector<48x256xbf16>
    %cst_13 = arith.constant dense<0.000000e+00> : vector<16x256xf32>
    %18 = tpu.matmul %15, %17, %cst_13 {dimension_numbers = #tpu.dot_dimension_numbers<[1], [0], [0], [1], [0, 0, 1, 1], [], []>} : vector<16x48xbf16>, vector<48x256xbf16>, vector<16x256xf32> -> vector<16x256xf32>
    %19 = arith.addf %14, %18 : vector<16x256xf32>
    %c0_14 = arith.constant 0 : index
    %c0_15 = arith.constant 0 : index
    %20 = vector.load %arg4[%c0_14, %c0_15] : memref<1x256xf32, #tpu.memory_space<vmem>>, vector<1x256xf32>
    %21 = vector.broadcast %20 : vector<1x256xf32> to vector<16x256xf32>
    %22 = arith.addf %19, %21 : vector<16x256xf32>
    %cst_16 = arith.constant 0.000000e+00 : f32
    %23 = vector.broadcast %cst_16 : f32 to vector<16x256xf32>
    %24 = arith.maximumf %22, %23 : vector<16x256xf32>
    %25 = vector.extract_strided_slice %24 {offsets = [0, 0], sizes = [8, 256], strides = [1, 1]} : vector<16x256xf32> to vector<8x256xf32>
    %26 = vector.extract_strided_slice %24 {offsets = [8, 0], sizes = [8, 256], strides = [1, 1]} : vector<16x256xf32> to vector<8x256xf32>
    %27 = arith.maximumf %25, %26 : vector<8x256xf32>
    %28 = vector.extract_strided_slice %27 {offsets = [0, 0], sizes = [8, 128], strides = [1, 1]} : vector<8x256xf32> to vector<8x128xf32>
    %29 = vector.extract_strided_slice %27 {offsets = [0, 128], sizes = [8, 128], strides = [1, 1]} : vector<8x256xf32> to vector<8x128xf32>
    %30 = arith.maximumf %28, %29 : vector<8x128xf32>
    %31 = arith.truncf %30 : vector<8x128xf32> to vector<8x128xbf16>
    %c0_17 = arith.constant 0 : index
    %c0_18 = arith.constant 0 : index
    %32 = vector.load %arg5[%c0_17, %c0_18] : memref<16x8xbf16, #tpu.memory_space<vmem>>, vector<16x8xbf16>
    %cst_19 = arith.constant dense<0.000000e+00> : vector<16x128xf32>
    %33 = tpu.matmul %32, %31, %cst_19 {dimension_numbers = #tpu.dot_dimension_numbers<[1], [0], [0], [1], [0, 0, 1, 1], [], []>} : vector<16x8xbf16>, vector<8x128xbf16>, vector<16x128xf32> -> vector<16x128xf32>
    %34 = arith.truncf %33 : vector<16x128xf32> to vector<16x128xbf16>
    %35 = vector.extract_strided_slice %34 {offsets = [0, 0], sizes = [8, 128], strides = [1, 1]} : vector<16x128xbf16> to vector<8x128xbf16>
    %c0_20 = arith.constant 0 : index
    %c0_21 = arith.constant 0 : index
    %c0_22 = arith.constant 0 : index
    %36 = vector.load %arg6[%c0_20, %c0_21, %c0_22] : memref<3x128x256xbf16, #tpu.memory_space<vmem>>, vector<1x128x256xbf16>
    %37 = vector.shape_cast %36 : vector<1x128x256xbf16> to vector<128x256xbf16>
    %cst_23 = arith.constant dense<0.000000e+00> : vector<8x256xf32>
    %38 = tpu.matmul %35, %37, %cst_23 {dimension_numbers = #tpu.dot_dimension_numbers<[1], [0], [0], [1], [0, 0, 1, 1], [], []>} : vector<8x128xbf16>, vector<128x256xbf16>, vector<8x256xf32> -> vector<8x256xf32>
    %39 = vector.extract_strided_slice %34 {offsets = [4, 0], sizes = [8, 128], strides = [1, 1]} : vector<16x128xbf16> to vector<8x128xbf16>
    %c1_24 = arith.constant 1 : index
    %c0_25 = arith.constant 0 : index
    %c0_26 = arith.constant 0 : index
    %40 = vector.load %arg6[%c1_24, %c0_25, %c0_26] : memref<3x128x256xbf16, #tpu.memory_space<vmem>>, vector<1x128x256xbf16>
    %41 = vector.shape_cast %40 : vector<1x128x256xbf16> to vector<128x256xbf16>
    %cst_27 = arith.constant dense<0.000000e+00> : vector<8x256xf32>
    %42 = tpu.matmul %39, %41, %cst_27 {dimension_numbers = #tpu.dot_dimension_numbers<[1], [0], [0], [1], [0, 0, 1, 1], [], []>} : vector<8x128xbf16>, vector<128x256xbf16>, vector<8x256xf32> -> vector<8x256xf32>
    %43 = arith.addf %38, %42 : vector<8x256xf32>
    %44 = vector.extract_strided_slice %34 {offsets = [8, 0], sizes = [8, 128], strides = [1, 1]} : vector<16x128xbf16> to vector<8x128xbf16>
    %c2_28 = arith.constant 2 : index
    %c0_29 = arith.constant 0 : index
    %c0_30 = arith.constant 0 : index
    %45 = vector.load %arg6[%c2_28, %c0_29, %c0_30] : memref<3x128x256xbf16, #tpu.memory_space<vmem>>, vector<1x128x256xbf16>
    %46 = vector.shape_cast %45 : vector<1x128x256xbf16> to vector<128x256xbf16>
    %cst_31 = arith.constant dense<0.000000e+00> : vector<8x256xf32>
    %47 = tpu.matmul %44, %46, %cst_31 {dimension_numbers = #tpu.dot_dimension_numbers<[1], [0], [0], [1], [0, 0, 1, 1], [], []>} : vector<8x128xbf16>, vector<128x256xbf16>, vector<8x256xf32> -> vector<8x256xf32>
    %48 = arith.addf %43, %47 : vector<8x256xf32>
    %c0_32 = arith.constant 0 : index
    %c0_33 = arith.constant 0 : index
    %49 = vector.load %arg7[%c0_32, %c0_33] : memref<1x256xf32, #tpu.memory_space<vmem>>, vector<1x256xf32>
    %50 = vector.broadcast %49 : vector<1x256xf32> to vector<8x256xf32>
    %51 = arith.addf %48, %50 : vector<8x256xf32>
    %cst_34 = arith.constant 0.000000e+00 : f32
    %52 = vector.broadcast %cst_34 : f32 to vector<8x256xf32>
    %53 = arith.maximumf %51, %52 : vector<8x256xf32>
    %54 = vector.extract_strided_slice %53 {offsets = [0, 0], sizes = [4, 256], strides = [1, 1]} : vector<8x256xf32> to vector<4x256xf32>
    %55 = vector.extract_strided_slice %53 {offsets = [4, 0], sizes = [4, 256], strides = [1, 1]} : vector<8x256xf32> to vector<4x256xf32>
    %56 = arith.maximumf %54, %55 : vector<4x256xf32>
    %57 = vector.extract_strided_slice %56 {offsets = [0, 0], sizes = [4, 128], strides = [1, 1]} : vector<4x256xf32> to vector<4x128xf32>
    %58 = vector.extract_strided_slice %56 {offsets = [0, 128], sizes = [4, 128], strides = [1, 1]} : vector<4x256xf32> to vector<4x128xf32>
    %59 = arith.maximumf %57, %58 : vector<4x128xf32>
    %60 = arith.truncf %59 : vector<4x128xf32> to vector<4x128xbf16>
    %c0_35 = arith.constant 0 : index
    %c0_36 = arith.constant 0 : index
    %61 = vector.load %arg8[%c0_35, %c0_36] : memref<8x4xbf16, #tpu.memory_space<vmem>>, vector<8x4xbf16>
    %cst_37 = arith.constant dense<0.000000e+00> : vector<8x128xf32>
    %62 = tpu.matmul %61, %60, %cst_37 {dimension_numbers = #tpu.dot_dimension_numbers<[1], [0], [0], [1], [0, 0, 1, 1], [], []>} : vector<8x4xbf16>, vector<4x128xbf16>, vector<8x128xf32> -> vector<8x128xf32>
    %63 = arith.truncf %62 : vector<8x128xf32> to vector<8x128xbf16>
    %64 = vector.extract_strided_slice %63 {offsets = [0, 0], sizes = [4, 128], strides = [1, 1]} : vector<8x128xbf16> to vector<4x128xbf16>
    %c0_38 = arith.constant 0 : index
    %c0_39 = arith.constant 0 : index
    %c0_40 = arith.constant 0 : index
    %65 = vector.load %arg9[%c0_38, %c0_39, %c0_40] : memref<3x128x256xbf16, #tpu.memory_space<vmem>>, vector<1x128x256xbf16>
    %66 = vector.shape_cast %65 : vector<1x128x256xbf16> to vector<128x256xbf16>
    %cst_41 = arith.constant dense<0.000000e+00> : vector<4x256xf32>
    %67 = tpu.matmul %64, %66, %cst_41 {dimension_numbers = #tpu.dot_dimension_numbers<[1], [0], [0], [1], [0, 0, 1, 1], [], []>} : vector<4x128xbf16>, vector<128x256xbf16>, vector<4x256xf32> -> vector<4x256xf32>
    %68 = vector.extract_strided_slice %63 {offsets = [2, 0], sizes = [4, 128], strides = [1, 1]} : vector<8x128xbf16> to vector<4x128xbf16>
    %c1_42 = arith.constant 1 : index
    %c0_43 = arith.constant 0 : index
    %c0_44 = arith.constant 0 : index
    %69 = vector.load %arg9[%c1_42, %c0_43, %c0_44] : memref<3x128x256xbf16, #tpu.memory_space<vmem>>, vector<1x128x256xbf16>
    %70 = vector.shape_cast %69 : vector<1x128x256xbf16> to vector<128x256xbf16>
    %cst_45 = arith.constant dense<0.000000e+00> : vector<4x256xf32>
    %71 = tpu.matmul %68, %70, %cst_45 {dimension_numbers = #tpu.dot_dimension_numbers<[1], [0], [0], [1], [0, 0, 1, 1], [], []>} : vector<4x128xbf16>, vector<128x256xbf16>, vector<4x256xf32> -> vector<4x256xf32>
    %72 = arith.addf %67, %71 : vector<4x256xf32>
    %73 = vector.extract_strided_slice %63 {offsets = [4, 0], sizes = [4, 128], strides = [1, 1]} : vector<8x128xbf16> to vector<4x128xbf16>
    %c2_46 = arith.constant 2 : index
    %c0_47 = arith.constant 0 : index
    %c0_48 = arith.constant 0 : index
    %74 = vector.load %arg9[%c2_46, %c0_47, %c0_48] : memref<3x128x256xbf16, #tpu.memory_space<vmem>>, vector<1x128x256xbf16>
    %75 = vector.shape_cast %74 : vector<1x128x256xbf16> to vector<128x256xbf16>
    %cst_49 = arith.constant dense<0.000000e+00> : vector<4x256xf32>
    %76 = tpu.matmul %73, %75, %cst_49 {dimension_numbers = #tpu.dot_dimension_numbers<[1], [0], [0], [1], [0, 0, 1, 1], [], []>} : vector<4x128xbf16>, vector<128x256xbf16>, vector<4x256xf32> -> vector<4x256xf32>
    %77 = arith.addf %72, %76 : vector<4x256xf32>
    %c0_50 = arith.constant 0 : index
    %c0_51 = arith.constant 0 : index
    %78 = vector.load %arg10[%c0_50, %c0_51] : memref<1x256xf32, #tpu.memory_space<vmem>>, vector<1x256xf32>
    %79 = vector.broadcast %78 : vector<1x256xf32> to vector<4x256xf32>
    %80 = arith.addf %77, %79 : vector<4x256xf32>
    %cst_52 = arith.constant 0.000000e+00 : f32
    %81 = vector.broadcast %cst_52 : f32 to vector<4x256xf32>
    %82 = arith.maximumf %80, %81 : vector<4x256xf32>
    %83 = vector.extract_strided_slice %82 {offsets = [0, 0], sizes = [2, 256], strides = [1, 1]} : vector<4x256xf32> to vector<2x256xf32>
    %84 = vector.extract_strided_slice %82 {offsets = [2, 0], sizes = [2, 256], strides = [1, 1]} : vector<4x256xf32> to vector<2x256xf32>
    %85 = arith.maximumf %83, %84 : vector<2x256xf32>
    %86 = vector.extract_strided_slice %85 {offsets = [0, 0], sizes = [2, 128], strides = [1, 1]} : vector<2x256xf32> to vector<2x128xf32>
    %87 = vector.extract_strided_slice %85 {offsets = [0, 128], sizes = [2, 128], strides = [1, 1]} : vector<2x256xf32> to vector<2x128xf32>
    %88 = arith.maximumf %86, %87 : vector<2x128xf32>
    %89 = arith.truncf %88 : vector<2x128xf32> to vector<2x128xbf16>
    %90 = arith.extf %89 : vector<2x128xbf16> to vector<2x128xf32>
    %cst_53 = arith.constant dense<0.000000e+00> : vector<128xf32>
    %91 = vector.multi_reduction <add>, %90, %cst_53 [0] : vector<2x128xf32> to vector<128xf32>
    %92 = vector.shape_cast %91 : vector<128xf32> to vector<1x128xf32>
    %93 = vector.extract_strided_slice %92 {offsets = [0, 0], sizes = [1, 64], strides = [1, 1]} : vector<1x128xf32> to vector<1x64xf32>
    %94 = vector.extract_strided_slice %92 {offsets = [0, 64], sizes = [1, 64], strides = [1, 1]} : vector<1x128xf32> to vector<1x64xf32>
    %95 = arith.addf %93, %94 : vector<1x64xf32>
    %cst_54 = arith.constant 2.500000e-01 : f32
    %96 = vector.broadcast %cst_54 : f32 to vector<1x64xf32>
    %97 = arith.mulf %95, %96 : vector<1x64xf32>
    %c0_55 = arith.constant 0 : index
    %c0_56 = arith.constant 0 : index
    %98 = vector.load %arg11[%c0_55, %c0_56] : memref<64x32xf32, #tpu.memory_space<vmem>>, vector<64x32xf32>
    %cst_57 = arith.constant dense<0.000000e+00> : vector<1x32xf32>
    %99 = tpu.matmul %97, %98, %cst_57 {dimension_numbers = #tpu.dot_dimension_numbers<[1], [0], [0], [1], [0, 0, 1, 1], [], []>} : vector<1x64xf32>, vector<64x32xf32>, vector<1x32xf32> -> vector<1x32xf32>
    %c0_58 = arith.constant 0 : index
    %c0_59 = arith.constant 0 : index
    %100 = vector.load %arg12[%c0_58, %c0_59] : memref<1x32xf32, #tpu.memory_space<vmem>>, vector<1x32xf32>
    %101 = arith.addf %99, %100 : vector<1x32xf32>
    %cst_60 = arith.constant 0.000000e+00 : f32
    %102 = vector.broadcast %cst_60 : f32 to vector<1x32xf32>
    %103 = arith.maximumf %101, %102 : vector<1x32xf32>
    %c0_61 = arith.constant 0 : index
    %c0_62 = arith.constant 0 : index
    %104 = vector.load %arg13[%c0_61, %c0_62] : memref<32x128xf32, #tpu.memory_space<vmem>>, vector<32x128xf32>
    %cst_63 = arith.constant dense<0.000000e+00> : vector<1x128xf32>
    %105 = tpu.matmul %103, %104, %cst_63 {dimension_numbers = #tpu.dot_dimension_numbers<[1], [0], [0], [1], [0, 0, 1, 1], [], []>} : vector<1x32xf32>, vector<32x128xf32>, vector<1x128xf32> -> vector<1x128xf32>
    %c0_64 = arith.constant 0 : index
    %c0_65 = arith.constant 0 : index
    %106 = vector.load %arg14[%c0_64, %c0_65] : memref<1x128xf32, #tpu.memory_space<vmem>>, vector<1x128xf32>
    %107 = arith.addf %105, %106 : vector<1x128xf32>
    %c0_66 = arith.constant 0 : index
    %c0_67 = arith.constant 0 : index
    %c0_68 = arith.constant 0 : index
    %108 = vector.load %arg15[%c0_66, %c0_67, %c0_68] : memref<1x1x128xf32, #tpu.memory_space<vmem>>, vector<1x1x128xf32>
    %109 = vector.shape_cast %108 : vector<1x1x128xf32> to vector<1x128xf32>
    %110 = vector.shape_cast %107 : vector<1x128xf32> to vector<1x1x128xf32>
    tpu.vector_store %arg15[%c0_66, %c0_67, %c0_68], %110 {strides = array<i32>} : memref<1x1x128xf32, #tpu.memory_space<vmem>>, vector<1x1x128xf32>,
    return
  }
  func.func @transform_0(%arg0: i32) -> (i32, i32, i32) {
    %c0_i32 = arith.constant 0 : i32
    %c0_i32_0 = arith.constant 0 : i32
    %c0_i32_1 = arith.constant 0 : i32
    return %arg0, %c0_i32, %c0_i32_0 : i32, i32, i32
  }
  func.func @transform_1(%arg0: i32) -> (i32, i32) {
    %c0_i32 = arith.constant 0 : i32
    %c0_i32_0 = arith.constant 0 : i32
    %c0_i32_1 = arith.constant 0 : i32
    return %c0_i32, %c0_i32_0 : i32, i32
  }
  func.func @transform_2(%arg0: i32) -> (i32, i32, i32) {
    %c0_i32 = arith.constant 0 : i32
    %c0_i32_0 = arith.constant 0 : i32
    %c0_i32_1 = arith.constant 0 : i32
    %c0_i32_2 = arith.constant 0 : i32
    return %c0_i32, %c0_i32_0, %c0_i32_1 : i32, i32, i32
  }
  func.func @transform_3(%arg0: i32) -> (i32, i32) {
    %c0_i32 = arith.constant 0 : i32
    %c0_i32_0 = arith.constant 0 : i32
    %c0_i32_1 = arith.constant 0 : i32
    return %c0_i32, %c0_i32_0 : i32, i32
  }
  func.func @transform_4(%arg0: i32) -> (i32, i32) {
    %c0_i32 = arith.constant 0 : i32
    %c0_i32_0 = arith.constant 0 : i32
    %c0_i32_1 = arith.constant 0 : i32
    return %c0_i32, %c0_i32_0 : i32, i32
  }
  func.func @transform_5(%arg0: i32) -> (i32, i32, i32) {
    %c0_i32 = arith.constant 0 : i32
    %c0_i32_0 = arith.constant 0 : i32
    %c0_i32_1 = arith.constant 0 : i32
    %c0_i32_2 = arith.constant 0 : i32
    return %c0_i32, %c0_i32_0, %c0_i32_1 : i32, i32, i32
  }
  func.func @transform_6(%arg0: i32) -> (i32, i32) {
    %c0_i32 = arith.constant 0 : i32
    %c0_i32_0 = arith.constant 0 : i32
    %c0_i32_1 = arith.constant 0 : i32
    return %c0_i32, %c0_i32_0 : i32, i32
  }
  func.func @transform_7(%arg0: i32) -> (i32, i32) {
    %c0_i32 = arith.constant 0 : i32
    %c0_i32_0 = arith.constant 0 : i32
    %c0_i32_1 = arith.constant 0 : i32
    return %c0_i32, %c0_i32_0 : i32, i32
  }
  func.func @transform_8(%arg0: i32) -> (i32, i32, i32) {
    %c0_i32 = arith.constant 0 : i32
    %c0_i32_0 = arith.constant 0 : i32
    %c0_i32_1 = arith.constant 0 : i32
    %c0_i32_2 = arith.constant 0 : i32
    return %c0_i32, %c0_i32_0, %c0_i32_1 : i32, i32, i32
  }
  func.func @transform_9(%arg0: i32) -> (i32, i32) {
    %c0_i32 = arith.constant 0 : i32
    %c0_i32_0 = arith.constant 0 : i32
    %c0_i32_1 = arith.constant 0 : i32
    return %c0_i32, %c0_i32_0 : i32, i32
  }
  func.func @transform_10(%arg0: i32) -> (i32, i32) {
    %c0_i32 = arith.constant 0 : i32
    %c0_i32_0 = arith.constant 0 : i32
    %c0_i32_1 = arith.constant 0 : i32
    return %c0_i32, %c0_i32_0 : i32, i32
  }
  func.func @transform_11(%arg0: i32) -> (i32, i32) {
    %c0_i32 = arith.constant 0 : i32
    %c0_i32_0 = arith.constant 0 : i32
    %c0_i32_1 = arith.constant 0 : i32
    return %c0_i32, %c0_i32_0 : i32, i32
  }
  func.func @transform_12(%arg0: i32) -> (i32, i32) {
    %c0_i32 = arith.constant 0 : i32
    %c0_i32_0 = arith.constant 0 : i32
    %c0_i32_1 = arith.constant 0 : i32
    return %c0_i32, %c0_i32_0 : i32, i32
  }
  func.func @transform_13(%arg0: i32) -> (i32, i32) {
    %c0_i32 = arith.constant 0 : i32
    %c0_i32_0 = arith.constant 0 : i32
    %c0_i32_1 = arith.constant 0 : i32
    return %c0_i32, %c0_i32_0 : i32, i32
  }
  func.func @transform_14(%arg0: i32) -> (i32, i32, i32) {
    %c0_i32 = arith.constant 0 : i32
    %c0_i32_0 = arith.constant 0 : i32
    %c0_i32_1 = arith.constant 0 : i32
    return %arg0, %c0_i32, %c0_i32_0 : i32, i32, i32
  }
}

</mosaic_0001>

<bundles_post_ra>
// kernel: lightweight_cnn_forward.1
= control target key start
LH: loop header
LB: loop body
LE: loop exit
PB: predicated region body
PF: predicated region fallthrough
CT: control target
= control target key end

     0   :  { %19 = vsyncpa [#allocation3], 0  ;;  %s3262_s0 = inlined_call_operand.vmem [shape: f32[2,16,48], index: 0, kind: input, shape index: {}]   ;;  %s3263_s1 = inlined_call_operand.vmem [shape: bf16[32,16], index: 1, kind: input, shape index: {}]   ;;  %s3264_s2 = inlined_call_operand.hbm [shape: bf16[3,48,256], index: 2, kind: input, shape index: {}]   ;;  %s3265_s3 = inlined_call_operand.vmem [shape: f32[1,256], index: 3, kind: input, shape index: {}]   ;;  %s3266_s4 = inlined_call_operand.vmem [shape: bf16[16,8], index: 4, kind: input, shape index: {}]   ;;  %s3267_s5 = inlined_call_operand.vmem [shape: bf16[3,128,256], index: 5, kind: input, shape index: {}]   ;;  %s3268_s6 = inlined_call_operand.vmem [shape: f32[1,256], index: 6, kind: input, shape index: {}]   ;;  %s3269_s7 = inlined_call_operand.vmem [shape: bf16[8,4], index: 7, kind: input, shape index: {}]   ;;  %s3270_s8 = inlined_call_operand.hbm [shape: bf16[3,128,256], index: 8, kind: input, shape index: {}]   ;;  %s3271_s9 = inlined_call_operand.vmem [shape: f32[1,256], index: 9, kind: input, shape index: {}]   ;;  %s3272_s10 = inlined_call_operand.vmem [shape: f32[64,32], index: 10, kind: input, shape index: {}]   ;;  %s3273_s11 = inlined_call_operand.vmem [shape: f32[1,32], index: 11, kind: input, shape index: {}]   ;;  %s3274_s12 = inlined_call_operand.vmem [shape: f32[32,128], index: 12, kind: input, shape index: {}]   ;;  %s3275_s13 = inlined_call_operand.hbm [shape: f32[1,128], index: 13, kind: input, shape index: {}]   ;;  %s3276_s14 = inlined_call_operand.hbm [shape: f32[2,1,128], index: 14, kind: output, shape index: {}]  }
   0x1   :  { %20 = vsyncpa [#allocation6], 0 }
   0x2   :  { %21 = vsyncpa [#allocation4], 0 }
   0x3   :  { %23 = vsyncpa [#allocation4 + $0x1], 0  ;;  %s2868_s29 = smov 0   ;;  %s2870_s30 = smov 0  }
   0x4   :  { %s2872_s15 = smov 0   ;;  %s2874_s16 = smov 0  }
   0x5 LB: > { %3283 = sst [smem:[#allocation12_spill]] %s2769_s29  ;;  %s2889_s17 = sadd.s32 4294967295, %s2781_s16   ;;  %s2781_s16 = sphi %s2874_s16, %s3299_s16   ;;  %s2777_s15 = sphi %s2872_s15, %s3301_s15   ;;  %s2773_s30 = sphi %s2870_s30, %s3303_s30   ;;  %s2769_s29 = sphi %s2868_s29, %s3302_s29  }
   0x6   : > { %3284 = sst [smem:[#allocation13_spill]] %s2777_s15  ;;  %s2142_s18 = sadd.s32 4294967294, %s2781_s16  }
   0x7   : > { %s2893_s19 = sadd.s32 1, %s2781_s16   ;;  %s335_s20 = sadd.s32 1, %s2777_s15 }
   0x8   : > { %3285 = sst [smem:[#allocation14_spill]] %s2893_s19  ;;  %s332_s21 = ssub.s32 %s2781_s16, %s2893_s19 }
   0x9   : > { %p345_p0 = scmp.ne.s32.totalorder %s2777_s15, %s2773_s30  ;;  %p333_p1 = scmp.eq.s32.totalorder %s332_s21, 0 }
   0xa   : > { %p346_p2 = scmp.eq.s32.totalorder %s2889_s17, 1  ;;  %p351_p3 = scmp.ne.s32.totalorder %s2773_s30, %s2769_s29 }
   0xb   : > { %p352_p4 = scmp.eq.s32.totalorder %s2142_s18, 1  ;;  %p2143_p7 = scmp.ge.s32.totalorder %s2781_s16, 1 }
   0xc   : > { %s2904_s22 = scalar_select %p333_p1, %s2777_s15, %s335_s20  }
   0xd   : > { %p2906_p5 = por %p346_p2, %p345_p0  ;;  %p2910_p6 = por %p352_p4, %p351_p3 }
   0xe   : > { %3286 = sst [smem:[#allocation15_spill]] %s2904_s22  ;;  %p359_p8 = scmp.lt.s32.totalorder %s2781_s16, 3 }
   0xf   : > { %s3288_s24 = scalar_select %p2910_p6, 1, 0 }
  0x10   : > { %p3281_p9 = scmp.eq.s32.totalorder %s2889_s17, 0  ;;  %p2917_p10 = pnand %p2143_p7, %p359_p8 }
  0x11   : > { %3289 = sst [smem:[#allocation16_spill]] %s3288_s24  ;;  %s2783_s26 = smov [#allocation5]  }
  0x12   : > { %p2399_p11 = pneg %p2917_p10  ;;  %s402_s27 = sshll.u32 %s2783_s26, 4  ;;  %s403_s27 = int_to_ptr.vmem [resolvable:$true] %s402_s27 }
  0x13   : > { %s2784_s18 = smov [#allocation2]   ;;  %s2785_s21 = smov [#allocation7]  }
  0x14   : > { %p2925_p12 = pnand %p3281_p9, %p2399_p11  ;;  %s374_s20 = sshll.u32 %s2784_s18, 4  ;;  %s375_s20 = int_to_ptr.vmem [resolvable:$true] %s374_s20 }
  0x15   : > { %s428_s22 = sshll.u32 %s2785_s21, 4  ;;  %s2646_s15 = scalar_lea.vmem %s403_s27, 6144  ;;  %s429_s22 = int_to_ptr.vmem [resolvable:$true] %s428_s22 }
  0x16   : > { %p2637_p13 = pneg %p2925_p12  ;;  %p2647_p0 = scmp.ne.s32.totalorder %s403_s27, %s2646_s15 }
  0x17   : > { %p2654_p3 = scmp.lt.s32.totalorder %s403_s27, %s403_s27  ;;  %p2655_p4 = scmp.lt.s32.totalorder %s2646_s15, %s2646_s15 }
  0x18   : > { %p2649_p1 = pnand %p2647_p0, %p2637_p13 }
  0x19   : > { %p2656_p7 = por %p2655_p4, %p2654_p3 }
  0x1a   : > { %p2650_p2 = pneg %p2649_p1 }
  0x1c   : > { %p2657_p8 = pnand %p2656_p7, %p2650_p2 }
  0x1e   : > { %2660 = shalt.err (!%p2657_p8)
}
  0x1f   : > { %s2786_s26 = smov 128   ;;  %s2787_s18 = smov 8  }
  0x20   : > { %2405 = dma.hbm_to_vmem [thread:$0]  (!%p2925_p12), %s3270_s8, 6144, %s403_s27, [#allocation6], %s2786_s26, %s2786_s26, %s2787_s18  }
  0x21   : > { %s2672_s24 = scalar_lea.vmem %s375_s20, 2304  ;;  %p2680_p9 = scmp.lt.s32.totalorder %s375_s20, %s375_s20 }
  0x22   : > { %p2673_p11 = scmp.ne.s32.totalorder %s375_s20, %s2672_s24  ;;  %p2681_p6 = scmp.lt.s32.totalorder %s2672_s24, %s2672_s24 }
  0x24   : > { %p2675_p0 = pnand %p2673_p11, %p2637_p13  ;;  %p2682_p3 = por %p2681_p6, %p2680_p9 }
  0x26   : > { %p2676_p1 = pneg %p2675_p0 }
  0x28   : > { %p2683_p2 = pnand %p2682_p3, %p2676_p1 }
  0x2a   : > { %2686 = shalt.err (!%p2683_p2)
}
  0x2b   : > { %2402 = dma.hbm_to_vmem [thread:$0]  (!%p2925_p12), %s3264_s2, 2304, %s375_s20, [#allocation3], %s2786_s26, %s2786_s26, %s2787_s18  }
  0x2c   : > { %s2698_s19 = scalar_lea.vmem %s429_s22, 16  ;;  %s2705_s27 = scalar_lea.vmem %s429_s22, 32 }
  0x2d   : > { %p2699_p4 = scmp.ne.s32.totalorder %s429_s22, %s2698_s19  ;;  %p2706_p11 = scmp.lt.s32.totalorder %s429_s22, %s429_s22 }
  0x2e   : > { %p2707_p0 = scmp.lt.s32.totalorder %s2705_s27, %s2698_s19 }
  0x2f   : > { %p2701_p7 = pnand %p2699_p4, %p2637_p13 }
  0x30   : > { %p2708_p6 = por %p2707_p0, %p2706_p11 }
  0x31   : > { %p2702_p8 = pneg %p2701_p7 }
  0x33   : > { %p2709_p9 = pnand %p2708_p6, %p2702_p8 }
  0x35   : > { %2712 = shalt.err (!%p2709_p9)
}
  0x36   : > { %2408 = dma.hbm_to_vmem [thread:$0]  (!%p2925_p12), %s3275_s13, 16, %s429_s22, [#allocation6]  }
  0x37   : > { %449 = sbr.rel (%p2917_p10) target bundleno = 1931 (0x78b), region = 76  ;;  %p3292_p1 = scmp.eq.s32.totalorder (!%p2917_p10), %s2889_s17, 0 }
  0x3c   : > { %2756 = dma.done.wait (%p3292_p1), [#allocation3], 2304   ;;  %p3293_p13 = pmov %p3292_p1 }
  0x3d   : > { %p3294_p3 = pmov %p3292_p1 }
  0x3e   : > { %2758 = vsyncadd (%p3293_p13), [#allocation3], 4294964992 }
  0x3f   : > { %2760 = dma.done.wait (%p3294_p3), [#allocation6], 6160   ;;  %p3295_p2 = pmov %p3292_p1 }
  0x40   : > { %p502_p4 = scmp.lt.s32.totalorder %s2889_s17, 1  ;;  %vm525_vm0 = vcmask 130048   ;;  %v2461_v3 = vld [vmem:[%s3263_s1] sm:$0xff]   ;;  %v2462_v4 = vld [vmem:[%s3263_s1 + $0x8] sm:$0xff]   ;;  %v2466_v7 = vld [vmem:[#allocation2 + $0x54] ss:$8 sps:$4 sm:$0xff]   ;;  %v844_v50 = vlaneseq }
  0x41   : > { %2762 = vsyncadd (%p3295_p2), [#allocation6], 4294961136  ;;  %2339 = vmatprep.mubr.msk.bf16.mxu0 %vm525_vm0, %v2461_v3  ;;  %v2463_v5 = vld [vmem:[#allocation2 + $0x20] ss:$8 sps:$4 sm:$0xff]   ;;  %v2465_v6 = vld [vmem:[#allocation2 + $0x24] ss:$8 sps:$4 sm:$0xff]   ;;  %646 = vmatprep.subr.bf16.mxu1 %v2466_v7 }
  0x42   : > { %s503_s29 = scalar_select %p502_p4, %s2889_s17, 1  ;;  %v2468_v8 = vld [vmem:[#allocation2 + $0x50] ss:$8 sps:$4 sm:$0xff]   ;;  %v2471_v9 = vld [vmem:[#allocation2 + $0x14] ss:$8 sps:$4 sm:$0xff]   ;;  %v2788_v17 = vmov 0  }
  0x43   : > { %647 = vmatpush1.bf16.msra.mxu1 %v2468_v8  ;;  %v2469_v10 = vld [vmem:[#allocation2 + $0x10] ss:$8 sps:$4 sm:$0xff]   ;;  %v2472_v11 = vld [vmem:[#allocation2 + $0x44] ss:$8 sps:$4 sm:$0xff]   ;;  %v2474_v12 = vld [vmem:[#allocation2 + $0x40] ss:$8 sps:$4 sm:$0xff]   ;;  %668 = vmatprep.mubr.bf16.mxu1 %v2788_v17 }
  0x44   : > { %s2315_s22 = sshll.u32 %s503_s29, 4  ;;  %648 = vmatprep.subr.bf16.mxu1 %v2472_v11  ;;  %v2477_v13 = vld [vmem:[#allocation2 + $0x4] ss:$8 sps:$4 sm:$0xff]   ;;  %v2475_v14 = vld [vmem:[#allocation2] ss:$8 sps:$4 sm:$0xff]   ;;  %vm632_vm1 = vcmask 392192  }
  0x45   : > { %s506_s20 = scalar_lea.vmem %s3262_s0, %s2315_s22  ;;  %v2478_v15 = vld [vmem:[#allocation2 + $0x34] ss:$8 sps:$4 sm:$0xff]   ;;  %v2480_v16 = vld [vmem:[#allocation2 + $0x30] ss:$8 sps:$4 sm:$0xff]   ;;  %v2483_v18 = vld [vmem:[#allocation2 + $0x84] ss:$8 sps:$4 sm:$0xff]  }
  0x46   : > { %v508_v0 = vld [vmem:[%s506_s20] sm:$0xff]  ;;  %v509_v1 = vld [vmem:[%s506_s20 + $0x8] sm:$0xff]  ;;  %vm598_vm2 = vcmask 1043456   ;;  %v2486_v28 = vld [vmem:[#allocation2 + $0x74] ss:$8 sps:$4 sm:$0xff]   ;;  %v2789_v33 = vmov 0.0  }
  0x47   : > { %v510_v2 = vpack.c.bf16 %v509_v1, %v508_v0  ;;  %649 = vmatpush1.bf16.msra.mxu1 %v2474_v12  ;;  %v2481_v27 = vld [vmem:[#allocation2 + $0x80] ss:$8 sps:$4 sm:$0xff]   ;;  %v2484_v30 = vld [vmem:[#allocation2 + $0x70] ss:$8 sps:$4 sm:$0xff]   ;;  %v2489_v31 = vld [vmem:[#allocation2 + $0x64] ss:$8 sps:$4 sm:$0xff]  }
  0x48   : > { %650 = vmatprep.subr.bf16.mxu1 %v2478_v15  ;;  %v2487_v32 = vld [vmem:[#allocation2 + $0x60] ss:$8 sps:$4 sm:$0xff]   ;;  %vm2790_vm3 = vmmov 0   ;;  %v2491_v34 = vld [vmem:[%s3267_s5 + $0x70] ss:$8 sps:$4 sm:$0xff]   ;;  %v845_v53 = vshrl.u32 %v844_v50, 7 }
  0x49   : > { %2337 = vmatprep.subr.bf16.mxu0 %v510_v2  ;;  %v2493_v35 = vld [vmem:[%s3267_s5 + $0x74] ss:$8 sps:$4 sm:$0xff]   ;;  %v2499_v36 = vld [vmem:[%s3267_s5 + $0x64] ss:$8 sps:$4 sm:$0xff]   ;;  %v2497_v37 = vld [vmem:[%s3267_s5 + $0x60] ss:$8 sps:$4 sm:$0xff]  }
  0x4a   : > { %2338 = vmatpush3.bf16.msra.mxu0 %v510_v2  ;;  %v2505_v38 = vld [vmem:[%s3267_s5 + $0x54] ss:$8 sps:$4 sm:$0xff]   ;;  %v2503_v39 = vld [vmem:[%s3267_s5 + $0x50] ss:$8 sps:$4 sm:$0xff]   ;;  %v2511_v40 = vld [vmem:[%s3267_s5 + $0x44] ss:$8 sps:$4 sm:$0xff]  }
  0x4b   : > { %722 = vmatprep.subr.bf16.mxu0 %v2465_v6  ;;  %651 = vmatpush1.bf16.msra.mxu1 %v2480_v16  ;;  %v2509_v41 = vld [vmem:[%s3267_s5 + $0x40] ss:$8 sps:$4 sm:$0xff]   ;;  %v2517_v42 = vld [vmem:[%s3267_s5 + $0x34] ss:$8 sps:$4 sm:$0xff]   ;;  %v2515_v43 = vld [vmem:[%s3267_s5 + $0x30] ss:$8 sps:$4 sm:$0xff]  }
  0x4c   : > { %805 = vmatprep.subr.bf16.mxu1 %v2483_v18  ;;  %v2523_v44 = vld [vmem:[%s3267_s5 + $0x24] ss:$8 sps:$4 sm:$0xff]   ;;  %v2521_v45 = vld [vmem:[%s3267_s5 + $0x20] ss:$8 sps:$4 sm:$0xff]   ;;  %v2529_v46 = vld [vmem:[%s3267_s5 + $0x14] ss:$8 sps:$4 sm:$0xff]  }
  0x4d   : > { %2340 = vmatmul.mubr.msk.bf16.vlgmr.msra.gmra.mxu0 %vm525_vm0, %v2462_v4  ;;  %v2527_v47 = vld [vmem:[%s3267_s5 + $0x10] ss:$8 sps:$4 sm:$0xff]   ;;  %v3029_v56 = vsub.s32 0, %v845_v53  ;;  %v842_v57 = vld [vmem:[%s3265_s3] sm:$0x3]  ;;  %v3034_v58 = vsub.s32 1, %v845_v53 }
  0x4e   : > { %723 = vmatpush1.bf16.msra.mxu0 %v2463_v5  ;;  %744 = vmatprep.mubr.bf16.mxu0 %v2788_v17  ;;  %vm873_vm4 = vcmask 64512   ;;  %v2544_v53 = vld [vmem:[%s3267_s5 + $0x164] ss:$8 sps:$4 sm:$0xff]   ;;  %vm1374_vm5 = vcmask 1041408   ;;  %vm1370_vm6 = vcmask 31744   ;;  %s2791_s22 = smov 64  }
  0x4f   : > { %724 = vmatprep.subr.bf16.mxu0 %v2471_v9  ;;  %v847_v63 = vrot.slane %v842_v57, %v3029_v56  ;;  %v851_v4 = vrot.slane %v842_v57, %v3034_v58  ;;  %v2545_v57 = vld [vmem:[%s3267_s5 + $0x150] ss:$8 sps:$4 sm:$0xff]   ;;  %vm1888_vm7 = vcmask 523264   ;;  %vm1968_vm8 = vcmask 261120   ;;  %s500_s24 = sand.u32 1, %s2773_s30   ;;  %s2312_s21 = sshll.u32 %s2889_s17, 4 }
  0x50   : > { %s501_s29 = scalar_lea.vmem [#allocation8], %s500_s24  ;;  %s3227_s20 = scalar_lea.hbm %s3276_s14, %s2312_s21 }
  0x51   : > { %s2044_s26 = scalar_lea.sflag [#allocation4], %s500_s24  ;;  %s2792_s15 = smov [#allocation8]  }
  0x52   : > { %725 = vmatpush1.bf16.msra.mxu0 %v2469_v10  ;;  %s2717_s17 = sshll.u32 %s2792_s15, 4  ;;  %s2718_s17 = int_to_ptr.vmem [resolvable:$false] %s2717_s17 }
  0x53   : > { %726 = vmatprep.subr.bf16.mxu0 %v2477_v13  ;;  %s2719_s19 = scalar_lea.vmem %s2718_s17, 32 }
  0x56   : > { %727 = vmatpush1.bf16.msra.mxu0 %v2475_v14 }
  0x57   : > { %2343 = vmatprep.subr.bf16.mxu0 %v2789_v33 }
 0x10d   : > { %v2341_v19 = vpop.f32.mrf.mxu0 }
 0x10f   : > { %v566_v20 = vpop.f32.mrf.mxu0 }
 0x111   : > { %v2342_v21 = vpop.f32.mrf.mxu0 }
 0x112   : > { %v582_v22 = vpack.c.bf16 %v2342_v21, %v2341_v19 }
 0x113   : > { %v569_v23 = vpop.f32.mrf.mxu0 }
 0x114   : > { %v581_v24 = vpack.c.bf16 %v569_v23, %v566_v20  ;;  %v600_v25 = vrot.slane %v582_v22, 4 }
 0x116   : > { %v599_v26 = vrot.slane %v581_v24, 4  ;;  %2171 = vmatmul.mubr.msk.bf16.vlgmr.msra.gmra.mxu0 %vm632_vm1, %v581_v24  ;;  %v2496_v24 = vld [vmem:[%s3267_s5 + $0xf4] ss:$8 sps:$4 sm:$0xff]  }
 0x117   : > { %2345 = vmatprep.mubr.msk.bf16.mxu0 %vm2790_vm3, %v2789_v33 }
 0x118   : > { %v601_v29 = vsel %vm598_vm2, %v599_v26, %v600_v25  ;;  %v2490_v26 = vld [vmem:[%s3266_s4] sm:$0xff]  }
 0x119   : > { %2164 = vmatmul.mubr.msk.bf16.vlgmr.msra.gmra.mxu1 %vm632_vm1, %v601_v29  ;;  %v2500_v29 = vld [vmem:[%s3267_s5 + $0xe0] ss:$8 sps:$4 sm:$0xff]  }
 0x11a   : > { %806 = vmatpush1.bf16.msra.mxu1 %v2481_v27  ;;  %827 = vmatprep.mubr.bf16.mxu1 %v2788_v17  ;;  %v2494_v27 = vld [vmem:[%s3267_s5 + $0xf0] ss:$8 sps:$4 sm:$0xff]  }
 0x11b   : > { %807 = vmatprep.subr.bf16.mxu1 %v2486_v28  ;;  %v2502_v28 = vld [vmem:[%s3267_s5 + $0xe4] ss:$8 sps:$4 sm:$0xff]  }
 0x11e   : > { %808 = vmatpush1.bf16.msra.mxu1 %v2484_v30  ;;  %v2508_v30 = vld [vmem:[%s3267_s5 + $0xd4] ss:$8 sps:$4 sm:$0xff]  }
 0x11f   : > { %809 = vmatprep.subr.bf16.mxu1 %v2489_v31  ;;  %v2506_v31 = vld [vmem:[%s3267_s5 + $0xd0] ss:$8 sps:$4 sm:$0xff]  }
 0x122   : > { %810 = vmatpush1.bf16.msra.mxu1 %v2487_v32  ;;  %v2514_v32 = vld [vmem:[%s3267_s5 + $0xc4] ss:$8 sps:$4 sm:$0xff]  }
 0x123   : > { %1160 = vmatprep.subr.bf16.mxu1 %v2493_v35  ;;  %v2520_v35 = vld [vmem:[%s3267_s5 + $0xb4] ss:$8 sps:$4 sm:$0xff]  }
 0x125   : > { %2178 = vmatmul.mubr.msk.bf16.vlgmr.msra.gmra.mxu1 %vm632_vm1, %v582_v22 }
 0x126   : > { %1192 = vmatprep.mubr.bf16.mxu1 %v2788_v17  ;;  %1161 = vmatpush1.bf16.msra.mxu1 %v2491_v34  ;;  %v2512_v34 = vld [vmem:[%s3267_s5 + $0xc0] ss:$8 sps:$4 sm:$0xff]  }
 0x127   : > { %1162 = vmatprep.subr.bf16.mxu1 %v2499_v36  ;;  %v2518_v36 = vld [vmem:[%s3267_s5 + $0xb0] ss:$8 sps:$4 sm:$0xff]  }
 0x12a   : > { %1163 = vmatpush1.bf16.msra.mxu1 %v2497_v37  ;;  %v2526_v37 = vld [vmem:[%s3267_s5 + $0xa4] ss:$8 sps:$4 sm:$0xff]  }
 0x12b   : > { %1164 = vmatprep.subr.bf16.mxu1 %v2505_v38  ;;  %v2524_v38 = vld [vmem:[%s3267_s5 + $0xa0] ss:$8 sps:$4 sm:$0xff]  }
 0x12e   : > { %1165 = vmatpush1.bf16.msra.mxu1 %v2503_v39  ;;  %v2532_v39 = vld [vmem:[%s3267_s5 + $0x94] ss:$8 sps:$4 sm:$0xff]  }
 0x12f   : > { %1166 = vmatprep.subr.bf16.mxu1 %v2511_v40  ;;  %v2530_v40 = vld [vmem:[%s3267_s5 + $0x90] ss:$8 sps:$4 sm:$0xff]  }
 0x132   : > { %1167 = vmatpush1.bf16.msra.mxu1 %v2509_v41  ;;  %v2535_v41 = vld [vmem:[%s3267_s5 + $0x4] ss:$8 sps:$4 sm:$0xff]  }
 0x133   : > { %1168 = vmatprep.subr.bf16.mxu1 %v2517_v42  ;;  %v2533_v42 = vld [vmem:[%s3267_s5] ss:$8 sps:$4 sm:$0xff]  }
 0x136   : > { %1169 = vmatpush1.bf16.msra.mxu1 %v2515_v43  ;;  %v2538_v43 = vld [vmem:[%s3267_s5 + $0x84] ss:$8 sps:$4 sm:$0xff]  }
 0x137   : > { %1170 = vmatprep.subr.bf16.mxu1 %v2523_v44  ;;  %v2536_v44 = vld [vmem:[%s3267_s5 + $0x80] ss:$8 sps:$4 sm:$0xff]  }
 0x13a   : > { %1171 = vmatpush1.bf16.msra.mxu1 %v2521_v45  ;;  %v2541_v45 = vld [vmem:[%s3267_s5 + $0x174] ss:$8 sps:$4 sm:$0xff]  }
 0x13b   : > { %1172 = vmatprep.subr.bf16.mxu1 %v2529_v46 }
 0x13e   : > { %1173 = vmatpush1.bf16.msra.mxu1 %v2527_v47 }
 0x13f   : > { %1174 = vmatprep.subr.bf16.mxu1 %v2535_v41 }
 0x142   : > { %1175 = vmatpush1.bf16.msra.mxu1 %v2533_v42 }
 0x143   : > { %2349 = vmatprep.subr.bf16.mxu1 %v2789_v33 }
 0x1d6   : > { %v746_v51 = vpop.f32.mrf.mxu0 }
 0x1d8   : > { %v748_v54 = vpop.f32.mrf.mxu0 }
 0x1d9   : > { %v670_v48 = vpop.f32.mrf.mxu1 }
 0x1da   : > { %v750_v59 = vpop.f32.mrf.mxu0  ;;  %v747_v61 = vadd.f32 %v746_v51, %v670_v48  ;;  %v2539_v51 = vld [vmem:[%s3267_s5 + $0x170] ss:$8 sps:$4 sm:$0xff]  }
 0x1db   : > { %v672_v49 = vpop.f32.mrf.mxu1 }
 0x1dc   : > { %v749_v62 = vadd.f32 %v748_v54, %v672_v49  ;;  %v752_v5 = vpop.f32.mrf.mxu0  ;;  %v2542_v54 = vld [vmem:[%s3267_s5 + $0x160] ss:$8 sps:$4 sm:$0xff]  }
 0x1dd   : > { %v674_v52 = vpop.f32.mrf.mxu1 }
 0x1de   : > { %v751_v1 = vadd.f32 %v750_v59, %v674_v52  ;;  %v2550_v59 = vld [vmem:[%s3267_s5 + $0x144] ss:$8 sps:$4 sm:$0xff]  }
 0x1df   : > { %v676_v55 = vpop.f32.mrf.mxu1 }
 0x1e0   : > { %v753_v7 = vadd.f32 %v752_v5, %v676_v55  ;;  %v2547_v55 = vld [vmem:[%s3267_s5 + $0x154] ss:$8 sps:$4 sm:$0xff]  }
 0x1e5   : > { %v829_v60 = vpop.f32.mrf.mxu1 }
 0x1e6   : > { %v838_v2 = vadd.f32 %v829_v60, %v747_v61  ;;  %v2548_v60 = vld [vmem:[%s3267_s5 + $0x140] ss:$8 sps:$4 sm:$0xff]   ;;  %v2553_v61 = vld [vmem:[%s3267_s5 + $0x134] ss:$8 sps:$4 sm:$0xff]  }
 0x1e7   : > { %v831_v0 = vpop.f32.mrf.mxu1 }
 0x1e8   : > { %v839_v3 = vadd.f32 %v831_v0, %v749_v62  ;;  %v854_v10 = vadd.f32 %v847_v63, %v838_v2  ;;  %v2551_v62 = vld [vmem:[%s3267_s5 + $0x130] ss:$8 sps:$4 sm:$0xff]   ;;  %v2554_v0 = vld [vmem:[%s3267_s5 + $0x120] ss:$8 sps:$4 sm:$0xff]  }
 0x1e9   : > { %v833_v6 = vpop.f32.mrf.mxu1  ;;  %v2557_v2 = vld [vmem:[%s3267_s5 + $0x110] ss:$8 sps:$4 sm:$0xff]  }
 0x1ea   : > { %v840_v8 = vadd.f32 %v833_v6, %v751_v1  ;;  %v855_v11 = vadd.f32 %v851_v4, %v839_v3  ;;  %v858_v16 = vmax.f32 %v854_v10, 0.0  ;;  %v2559_v1 = vld [vmem:[%s3267_s5 + $0x114] ss:$8 sps:$4 sm:$0xff]   ;;  %v2562_v3 = vld [vmem:[%s3267_s5 + $0x104] ss:$8 sps:$4 sm:$0xff]  }
 0x1eb   : > { %v835_v9 = vpop.f32.mrf.mxu1  ;;  %v2563_v6 = vld [vmem:[#allocation5 + $0x70] ss:$8 sps:$4 sm:$0xff]   ;;  %v2577_v10 = vld [vmem:[#allocation5 + $0x54] ss:$8 sps:$4 sm:$0xff]  }
 0x1ec   : > { %v856_v12 = vadd.f32 %v847_v63, %v840_v8  ;;  %v841_v13 = vadd.f32 %v835_v9, %v753_v7  ;;  %v859_v18 = vmax.f32 %v855_v11, 0.0  ;;  %v2556_v63 = vld [vmem:[%s3267_s5 + $0x124] ss:$8 sps:$4 sm:$0xff]   ;;  %v2571_v8 = vld [vmem:[#allocation5 + $0x64] ss:$8 sps:$4 sm:$0xff]  }
 0x1ed   : > { %v2565_v7 = vld [vmem:[#allocation5 + $0x74] ss:$8 sps:$4 sm:$0xff]   ;;  %v2569_v9 = vld [vmem:[#allocation5 + $0x60] ss:$8 sps:$4 sm:$0xff]   ;;  %v2575_v11 = vld [vmem:[#allocation5 + $0x50] ss:$8 sps:$4 sm:$0xff]  }
 0x1ee   : > { %v860_v14 = vmax.f32 %v856_v12, 0.0  ;;  %v857_v15 = vadd.f32 %v851_v4, %v841_v13  ;;  %v2560_v4 = vld [vmem:[%s3267_s5 + $0x100] ss:$8 sps:$4 sm:$0xff]   ;;  %v2583_v12 = vld [vmem:[#allocation5 + $0x44] ss:$8 sps:$4 sm:$0xff]  }
 0x1ef   : > { %v2581_v13 = vld [vmem:[#allocation5 + $0x40] ss:$8 sps:$4 sm:$0xff]  }
 0x1f0   : > { %v861_v19 = vmax.f32 %v857_v15, 0.0  ;;  %v862_v20 = vmax.f32 %v858_v16, %v860_v14  ;;  %v2589_v14 = vld [vmem:[#allocation5 + $0x34] ss:$8 sps:$4 sm:$0xff]   ;;  %v2587_v15 = vld [vmem:[#allocation5 + $0x30] ss:$8 sps:$4 sm:$0xff]  }
 0x1f1   : > { %v2595_v16 = vld [vmem:[#allocation5 + $0x24] ss:$8 sps:$4 sm:$0xff]  }
 0x1f2   : > { %v863_v21 = vmax.f32 %v859_v18, %v861_v19  ;;  %v2593_v18 = vld [vmem:[#allocation5 + $0x20] ss:$8 sps:$4 sm:$0xff]   ;;  %v2601_v19 = vld [vmem:[#allocation5 + $0x14] ss:$8 sps:$4 sm:$0xff]  }
 0x1f4   : > { %v864_v22 = vmax.f32 %v862_v20, %v863_v21  ;;  %v2599_v20 = vld [vmem:[#allocation5 + $0x10] ss:$8 sps:$4 sm:$0xff]   ;;  %v2607_v21 = vld [vmem:[#allocation5 + $0x4] ss:$8 sps:$4 sm:$0xff]  }
 0x1f6   : > { %v865_v23 = vpack.c.bf16 %v864_v22, %v864_v22  ;;  %v2605_v22 = vld [vmem:[#allocation5] ss:$8 sps:$4 sm:$0xff]  }
 0x1f8   : > { %v879_v25 = vsel %vm598_vm2, %v865_v23, 0 }
 0x1f9   : > { %2344 = vmatpush3.bf16.msra.mxu0 %v879_v25 }
 0x1fa   : > { %1039 = vmatprep.subr.bf16.mxu0 %v2496_v24 }
 0x1fc   : > { %2346 = vmatmul.mubr.msk.bf16.vlgmr.msra.gmra.mxu0 %vm873_vm4, %v2490_v26 }
 0x1fd   : > { %1040 = vmatpush1.bf16.msra.mxu0 %v2494_v27  ;;  %1071 = vmatprep.mubr.bf16.mxu0 %v2788_v17 }
 0x1fe   : > { %1041 = vmatprep.subr.bf16.mxu0 %v2502_v28 }
 0x201   : > { %1042 = vmatpush1.bf16.msra.mxu0 %v2500_v29 }
 0x202   : > { %1043 = vmatprep.subr.bf16.mxu0 %v2508_v30 }
 0x205   : > { %1044 = vmatpush1.bf16.msra.mxu0 %v2506_v31  ;;  %v1343_v31 = vld [vmem:[%s3268_s6] sm:$0x3] }
 0x206   : > { %1045 = vmatprep.subr.bf16.mxu0 %v2514_v32 }
 0x209   : > { %1046 = vmatpush1.bf16.msra.mxu0 %v2512_v34  ;;  %v1348_v34 = vrot.slane %v1343_v31, %v3029_v56 }
 0x20a   : > { %1047 = vmatprep.subr.bf16.mxu0 %v2520_v35 }
 0x20d   : > { %1048 = vmatpush1.bf16.msra.mxu0 %v2518_v36 }
 0x20e   : > { %1049 = vmatprep.subr.bf16.mxu0 %v2526_v37 }
 0x211   : > { %1050 = vmatpush1.bf16.msra.mxu0 %v2524_v38  ;;  %v1352_v38 = vrot.slane %v1343_v31, %v3034_v58 }
 0x212   : > { %1051 = vmatprep.subr.bf16.mxu0 %v2532_v39 }
 0x215   : > { %1052 = vmatpush1.bf16.msra.mxu0 %v2530_v40 }
 0x216   : > { %1053 = vmatprep.subr.bf16.mxu0 %v2538_v43 }
 0x219   : > { %1054 = vmatpush1.bf16.msra.mxu0 %v2536_v44 }
 0x21a   : > { %1300 = vmatprep.subr.bf16.mxu0 %v2541_v45 }
 0x2bc   : > { %v915_v46 = vpop.f32.mrf.mxu0 }
 0x2be   : > { %v2347_v47 = vpop.f32.mrf.mxu0 }
 0x2c0   : > { %v918_v48 = vpop.f32.mrf.mxu0 }
 0x2c1   : > { %v922_v49 = vpack.c.bf16 %v918_v48, %v915_v46 }
 0x2c2   : > { %v2348_v50 = vpop.f32.mrf.mxu0 }
 0x2c3   : > { %v957_v52 = vrot.slane %v922_v49, 2  ;;  %1193 = vmatmul.mubr.bf16.vlgmr.msra.gmra.mxu1 %v922_v49  ;;  %v1218_v5 = vrot.slane %v922_v49, 4 }
 0x2c4   : > { %2351 = vmatprep.mubr.msk.bf16.mxu1 %vm2790_vm3, %v2789_v33 }
 0x2c5   : > { %1072 = vmatmul.mubr.bf16.vlgmr.msra.gmra.mxu0 %v957_v52 }
 0x2c6   : > { %1301 = vmatpush1.bf16.msra.mxu0 %v2539_v51  ;;  %1332 = vmatprep.mubr.bf16.mxu0 %v2788_v17 }
 0x2c7   : > { %1302 = vmatprep.subr.bf16.mxu0 %v2544_v53  ;;  %v2568_v53 = vld [vmem:[#allocation5 + $0xf4] ss:$8 sps:$4 sm:$0xff]  }
 0x2ca   : > { %1303 = vmatpush1.bf16.msra.mxu0 %v2542_v54 }
 0x2cb   : > { %1304 = vmatprep.subr.bf16.mxu0 %v2547_v55  ;;  %v1369_v55 = vld [vmem:[%s3269_s7] sm:$0xf] }
 0x2ce   : > { %1305 = vmatpush1.bf16.msra.mxu0 %v2545_v57  ;;  %v2566_v57 = vld [vmem:[#allocation5 + $0xf0] ss:$8 sps:$4 sm:$0xff]  }
 0x2cf   : > { %1306 = vmatprep.subr.bf16.mxu0 %v2550_v59  ;;  %v2574_v59 = vld [vmem:[#allocation5 + $0xe4] ss:$8 sps:$4 sm:$0xff]  }
 0x2d2   : > { %1307 = vmatpush1.bf16.msra.mxu0 %v2548_v60  ;;  %v2572_v60 = vld [vmem:[#allocation5 + $0xe0] ss:$8 sps:$4 sm:$0xff]  }
 0x2d3   : > { %1308 = vmatprep.subr.bf16.mxu0 %v2553_v61  ;;  %v2580_v61 = vld [vmem:[#allocation5 + $0xd4] ss:$8 sps:$4 sm:$0xff]  }
 0x2d6   : > { %1309 = vmatpush1.bf16.msra.mxu0 %v2551_v62  ;;  %v2578_v62 = vld [vmem:[#allocation5 + $0xd0] ss:$8 sps:$4 sm:$0xff]  }
 0x2d7   : > { %1310 = vmatprep.subr.bf16.mxu0 %v2556_v63  ;;  %v2586_v63 = vld [vmem:[#allocation5 + $0xc4] ss:$8 sps:$4 sm:$0xff]  }
 0x2da   : > { %1311 = vmatpush1.bf16.msra.mxu0 %v2554_v0  ;;  %v2584_v0 = vld [vmem:[#allocation5 + $0xc0] ss:$8 sps:$4 sm:$0xff]  }
 0x2db   : > { %1312 = vmatprep.subr.bf16.mxu0 %v2559_v1  ;;  %v2592_v1 = vld [vmem:[#allocation5 + $0xb4] ss:$8 sps:$4 sm:$0xff]  }
 0x2de   : > { %1313 = vmatpush1.bf16.msra.mxu0 %v2557_v2  ;;  %v2590_v2 = vld [vmem:[#allocation5 + $0xb0] ss:$8 sps:$4 sm:$0xff]  }
 0x2df   : > { %1314 = vmatprep.subr.bf16.mxu0 %v2562_v3  ;;  %v2598_v3 = vld [vmem:[#allocation5 + $0xa4] ss:$8 sps:$4 sm:$0xff]  }
 0x2e2   : > { %1315 = vmatpush1.bf16.msra.mxu0 %v2560_v4  ;;  %v2596_v4 = vld [vmem:[#allocation5 + $0xa0] ss:$8 sps:$4 sm:$0xff]  }
 0x2e3   : > { %1656 = vmatprep.subr.bf16.mxu0 %v2565_v7  ;;  %v2610_v7 = vld [vmem:[#allocation5 + $0x84] ss:$8 sps:$4 sm:$0xff]  }
 0x2e5   : > { %1333 = vmatmul.mubr.bf16.vlgmr.msra.gmra.mxu0 %v1218_v5  ;;  %v2604_v5 = vld [vmem:[#allocation5 + $0x94] ss:$8 sps:$4 sm:$0xff]  }
 0x2e6   : > { %1688 = vmatprep.mubr.bf16.mxu0 %v2788_v17  ;;  %1657 = vmatpush1.bf16.msra.mxu0 %v2563_v6  ;;  %v2602_v6 = vld [vmem:[#allocation5 + $0x90] ss:$8 sps:$4 sm:$0xff]  }
 0x2e7   : > { %1658 = vmatprep.subr.bf16.mxu0 %v2571_v8  ;;  %v2608_v8 = vld [vmem:[#allocation5 + $0x80] ss:$8 sps:$4 sm:$0xff]  }
 0x2ea   : > { %1659 = vmatpush1.bf16.msra.mxu0 %v2569_v9  ;;  %v2613_v9 = vld [vmem:[#allocation5 + $0x174] ss:$8 sps:$4 sm:$0xff]  }
 0x2eb   : > { %1660 = vmatprep.subr.bf16.mxu0 %v2577_v10 }
 0x2ee   : > { %1661 = vmatpush1.bf16.msra.mxu0 %v2575_v11 }
 0x2ef   : > { %1662 = vmatprep.subr.bf16.mxu0 %v2583_v12 }
 0x2f2   : > { %1663 = vmatpush1.bf16.msra.mxu0 %v2581_v13  ;;  %v2611_v13 = vld [vmem:[#allocation5 + $0x170] ss:$8 sps:$4 sm:$0xff]  }
 0x2f3   : > { %1664 = vmatprep.subr.bf16.mxu0 %v2589_v14 }
 0x2f6   : > { %1665 = vmatpush1.bf16.msra.mxu0 %v2587_v15  ;;  %v2616_v15 = vld [vmem:[#allocation5 + $0x164] ss:$8 sps:$4 sm:$0xff]  }
 0x2f7   : > { %1666 = vmatprep.subr.bf16.mxu0 %v2595_v16 }
 0x2fa   : > { %1667 = vmatpush1.bf16.msra.mxu0 %v2593_v18 }
 0x2fb   : > { %1668 = vmatprep.subr.bf16.mxu0 %v2601_v19  ;;  %v2614_v19 = vld [vmem:[#allocation5 + $0x160] ss:$8 sps:$4 sm:$0xff]  }
 0x2fe   : > { %1669 = vmatpush1.bf16.msra.mxu0 %v2599_v20  ;;  %v2619_v20 = vld [vmem:[#allocation5 + $0x154] ss:$8 sps:$4 sm:$0xff]  }
 0x2ff   : > { %1670 = vmatprep.subr.bf16.mxu0 %v2607_v21  ;;  %v2617_v21 = vld [vmem:[#allocation5 + $0x150] ss:$8 sps:$4 sm:$0xff]  }
 0x302   : > { %1671 = vmatpush1.bf16.msra.mxu0 %v2605_v22  ;;  %v2622_v22 = vld [vmem:[#allocation5 + $0x144] ss:$8 sps:$4 sm:$0xff]  }
 0x303   : > { %2355 = vmatprep.subr.mxu0 %v2789_v33 }
 0x383   : > { %v1194_v23 = vpop.f32.mrf.mxu1 }
 0x385   : > { %v1073_v24 = vpop.f32.mrf.mxu0  ;;  %v1196_v25 = vpop.f32.mrf.mxu1 }
 0x386   : > { %v1195_v32 = vadd.f32 %v1194_v23, %v1073_v24  ;;  %v2620_v23 = vld [vmem:[#allocation5 + $0x140] ss:$8 sps:$4 sm:$0xff]   ;;  %v2625_v24 = vld [vmem:[#allocation5 + $0x134] ss:$8 sps:$4 sm:$0xff]  }
 0x387   : > { %v1075_v26 = vpop.f32.mrf.mxu0  ;;  %v1198_v27 = vpop.f32.mrf.mxu1 }
 0x388   : > { %v1197_v36 = vadd.f32 %v1196_v25, %v1075_v26  ;;  %v2623_v25 = vld [vmem:[#allocation5 + $0x130] ss:$8 sps:$4 sm:$0xff]   ;;  %v2628_v26 = vld [vmem:[#allocation5 + $0x124] ss:$8 sps:$4 sm:$0xff]   ;;  %v2626_v27 = vld [vmem:[#allocation5 + $0x120] ss:$8 sps:$4 sm:$0xff]  }
 0x389   : > { %v1077_v28 = vpop.f32.mrf.mxu0  ;;  %v1199_v29 = vpop.f32.mrf.mxu1 }
 0x38a   : > { %v2631_v28 = vld [vmem:[#allocation5 + $0x114] ss:$8 sps:$4 sm:$0xff]   ;;  %v2634_v29 = vld [vmem:[#allocation5 + $0x104] ss:$8 sps:$4 sm:$0xff]  }
 0x38b   : > { %v1078_v30 = vpop.f32.mrf.mxu0 }
 0x38c   : > { %v2632_v30 = vld [vmem:[#allocation5 + $0x100] ss:$8 sps:$4 sm:$0xff]  }
 0x3a5   : > { %v1334_v35 = vpop.f32.mrf.mxu0 }
 0x3a6   : > { %v1341_v37 = vadd.f32 %v1334_v35, %v1195_v32  ;;  %v1886_v32 = vld [vmem:[%s3272_s10 + $0x38] sm:$0xff]  ;;  %v1884_v35 = vld [vmem:[%s3272_s10 + $0x28] sm:$0xff] }
 0x3a7   : > { %v1336_v39 = vpop.f32.mrf.mxu0 }
 0x3a8   : > { %v1355_v40 = vadd.f32 %v1348_v34, %v1341_v37  ;;  %v1342_v41 = vadd.f32 %v1336_v39, %v1197_v36  ;;  %v1885_v34 = vld [vmem:[%s3272_s10 + $0x30] sm:$0xff]  ;;  %v1883_v36 = vld [vmem:[%s3272_s10 + $0x20] sm:$0xff]  ;;  %v1882_v37 = vld [vmem:[%s3272_s10 + $0x18] sm:$0xff] }
 0x3a9   : > { %v1338_v42 = vpop.f32.mrf.mxu0 }
 0x3aa   : > { %v1357_v43 = vmax.f32 %v1355_v40, 0.0  ;;  %v1356_v44 = vadd.f32 %v1352_v38, %v1342_v41 }
 0x3ab   : > { %v1339_v45 = vpop.f32.mrf.mxu0 }
 0x3ac   : > { %v1361_v46 = vrot.slane %v1357_v43, 4  ;;  %v1358_v47 = vmax.f32 %v1356_v44, 0.0 }
 0x3ae   : > { %v1362_v48 = vrot.slane %v1358_v47, 4  ;;  %v1365_v49 = vmax.f32 %v1357_v43, %v1361_v46  ;;  %v1839_v46 = vld [vmem:[%s3271_s9] sm:$0x3] }
 0x3b0   : > { %v1366_v50 = vmax.f32 %v1358_v47, %v1362_v48  ;;  %v1844_v48 = vrot.slane %v1839_v46, %v3029_v56 }
 0x3b2   : > { %v1367_v51 = vmax.f32 %v1365_v49, %v1366_v50 }
 0x3b4   : > { %v1368_v52 = vpack.c.bf16 %v1367_v51, %v1367_v51 }
 0x3b6   : > { %v1376_v54 = vsel %vm1374_vm5, %v1368_v52, 0  ;;  %v1848_v52 = vrot.slane %v1839_v46, %v3034_v58 }
 0x3b7   : > { %2350 = vmatpush3.bf16.msra.mxu1 %v1376_v54 }
 0x3b8   : > { %1535 = vmatprep.subr.bf16.mxu1 %v2568_v53 }
 0x3ba   : > { %2352 = vmatmul.mubr.msk.bf16.vlgmr.msra.gmra.mxu1 %vm1370_vm6, %v1369_v55 }
 0x3bb   : > { %1536 = vmatpush1.bf16.msra.mxu1 %v2566_v57  ;;  %1567 = vmatprep.mubr.bf16.mxu1 %v2788_v17 }
 0x3bc   : > { %1537 = vmatprep.subr.bf16.mxu1 %v2574_v59 }
 0x3bf   : > { %1538 = vmatpush1.bf16.msra.mxu1 %v2572_v60 }
 0x3c0   : > { %1539 = vmatprep.subr.bf16.mxu1 %v2580_v61 }
 0x3c3   : > { %1540 = vmatpush1.bf16.msra.mxu1 %v2578_v62 }
 0x3c4   : > { %1541 = vmatprep.subr.bf16.mxu1 %v2586_v63 }
 0x3c7   : > { %1542 = vmatpush1.bf16.msra.mxu1 %v2584_v0 }
 0x3c8   : > { %1543 = vmatprep.subr.bf16.mxu1 %v2592_v1 }
 0x3cb   : > { %1544 = vmatpush1.bf16.msra.mxu1 %v2590_v2 }
 0x3cc   : > { %1545 = vmatprep.subr.bf16.mxu1 %v2598_v3 }
 0x3cf   : > { %1546 = vmatpush1.bf16.msra.mxu1 %v2596_v4 }
 0x3d0   : > { %1547 = vmatprep.subr.bf16.mxu1 %v2604_v5  ;;  %v1881_v5 = vld [vmem:[%s3272_s10 + $0x10] sm:$0xff] }
 0x3d3   : > { %1548 = vmatpush1.bf16.msra.mxu1 %v2602_v6  ;;  %v1880_v6 = vld [vmem:[%s3272_s10 + $0x8] sm:$0xff] }
 0x3d4   : > { %1549 = vmatprep.subr.bf16.mxu1 %v2610_v7 }
 0x3d7   : > { %1550 = vmatpush1.bf16.msra.mxu1 %v2608_v8  ;;  %v1879_v8 = vld [vmem:[%s3272_s10] sm:$0xff] }
 0x3d8   : > { %1796 = vmatprep.subr.bf16.mxu1 %v2613_v9 }
 0x47a   : > { %v1412_v10 = vpop.f32.mrf.mxu1 }
 0x47b   : > { %v1418_v11 = vpack.c.bf16 %v1412_v10, %v1412_v10  ;;  %v1966_v10 = vld [vmem:[%s3274_s12 + $0x18] sm:$0xff] }
 0x47c   : > { %v2353_v12 = vpop.f32.mrf.mxu1 }
 0x47d   : > { %v1453_v14 = vrot.slane %v1418_v11, 1  ;;  %1689 = vmatmul.mubr.bf16.vlgmr.msra.gmra.mxu0 %v1418_v11  ;;  %v1714_v31 = vrot.slane %v1418_v11, 2 }
 0x47e   : > { %v1415_v16 = vpop.f32.mrf.mxu1  ;;  %2371 = vmatprep.mubr.msk.f32.mxu0 %vm2790_vm3, %v2789_v33  ;;  %2356 = vmatpush3.msra.mxu0 %v1886_v32 }
 0x47f   : > { %1568 = vmatmul.mubr.bf16.vlgmr.msra.gmra.mxu1 %v1453_v14  ;;  %2357 = vmatprep.subr.mxu0 %v2789_v33 }
 0x480   : > { %1797 = vmatpush1.bf16.msra.mxu1 %v2611_v13  ;;  %v2354_v18 = vpop.f32.mrf.mxu1  ;;  %1828 = vmatprep.mubr.bf16.mxu1 %v2788_v17  ;;  %v2629_v17 = vld [vmem:[#allocation5 + $0x110] ss:$8 sps:$4 sm:$0xff]  }
 0x481   : > { %1798 = vmatprep.subr.bf16.mxu1 %v2616_v15  ;;  %2358 = vmatpush3.msra.mxu0 %v1885_v34 }
 0x482   : > { %2359 = vmatprep.subr.mxu0 %v2789_v33 }
 0x483   : > { %2360 = vmatpush3.msra.mxu0 %v1884_v35 }
 0x484   : > { %1799 = vmatpush1.bf16.msra.mxu1 %v2614_v19  ;;  %2361 = vmatprep.subr.mxu0 %v2789_v33  ;;  %v1965_v19 = vld [vmem:[%s3274_s12 + $0x10] sm:$0xff] }
 0x485   : > { %1800 = vmatprep.subr.bf16.mxu1 %v2619_v20  ;;  %2362 = vmatpush3.msra.mxu0 %v1883_v36  ;;  %v1964_v20 = vld [vmem:[%s3274_s12 + $0x8] sm:$0xff] }
 0x486   : > { %2363 = vmatprep.subr.mxu0 %v2789_v33 }
 0x487   : > { %2364 = vmatpush3.msra.mxu0 %v1882_v37 }
 0x488   : > { %1801 = vmatpush1.bf16.msra.mxu1 %v2617_v21  ;;  %2365 = vmatprep.subr.mxu0 %v2789_v33  ;;  %v1963_v21 = vld [vmem:[%s3274_s12] sm:$0xff] }
 0x489   : > { %1802 = vmatprep.subr.bf16.mxu1 %v2622_v22  ;;  %2366 = vmatpush3.msra.mxu0 %v1881_v5  ;;  %v1887_v22 = vld [vmem:[%s3273_s11] sm:$0x1] }
 0x48a   : > { %2367 = vmatprep.subr.mxu0 %v2789_v33 }
 0x48b   : > { %2368 = vmatpush3.msra.mxu0 %v1880_v6 }
 0x48c   : > { %1803 = vmatpush1.bf16.msra.mxu1 %v2620_v23  ;;  %2369 = vmatprep.subr.mxu0 %v2789_v33 }
 0x48d   : > { %1804 = vmatprep.subr.bf16.mxu1 %v2625_v24  ;;  %2370 = vmatpush3.msra.mxu0 %v1879_v8 }
 0x490   : > { %1805 = vmatpush1.bf16.msra.mxu1 %v2623_v25 }
 0x491   : > { %1806 = vmatprep.subr.bf16.mxu1 %v2628_v26 }
 0x494   : > { %1807 = vmatpush1.bf16.msra.mxu1 %v2626_v27  ;;  %v1967_v27 = vld [vmem:[#allocation7] sm:$0x1] }
 0x495   : > { %1808 = vmatprep.subr.bf16.mxu1 %v2631_v28 }
 0x498   : > { %1809 = vmatpush1.bf16.msra.mxu1 %v2629_v17 }
 0x499   : > { %1810 = vmatprep.subr.bf16.mxu1 %v2634_v29 }
 0x49c   : > { %1811 = vmatpush1.bf16.msra.mxu1 %v2632_v30 }
 0x49d   : > { %2374 = vmatprep.subr.mxu1 %v2789_v33 }
 0x49f   : > { %1829 = vmatmul.mubr.bf16.vlgmr.msra.gmra.mxu1 %v1714_v31 }
 0x4a0   : > { %2382 = vmatprep.mubr.msk.f32.mxu1 %vm2790_vm3, %v2789_v33  ;;  %2375 = vmatpush3.msra.mxu1 %v1966_v10 }
 0x4a1   : > { %2376 = vmatprep.subr.mxu1 %v2789_v33 }
 0x4a2   : > { %2377 = vmatpush3.msra.mxu1 %v1965_v19 }
 0x4a3   : > { %2378 = vmatprep.subr.mxu1 %v2789_v33 }
 0x4a4   : > { %2379 = vmatpush3.msra.mxu1 %v1964_v20 }
 0x4a5   : > { %2380 = vmatprep.subr.mxu1 %v2789_v33 }
 0x4a6   : > { %2381 = vmatpush3.msra.mxu1 %v1963_v21 }
 0x53d   : > { %v1690_v38 = vpop.f32.mrf.mxu0 }
 0x53f   : > { %v1569_v39 = vpop.f32.mrf.mxu1  ;;  %v1692_v40 = vpop.f32.mrf.mxu0 }
 0x540   : > { %v1691_v47 = vadd.f32 %v1690_v38, %v1569_v39 }
 0x541   : > { %v1571_v41 = vpop.f32.mrf.mxu1  ;;  %v1694_v42 = vpop.f32.mrf.mxu0 }
 0x542   : > { %v1693_v50 = vadd.f32 %v1692_v40, %v1571_v41 }
 0x543   : > { %v1573_v43 = vpop.f32.mrf.mxu1  ;;  %v1695_v44 = vpop.f32.mrf.mxu0 }
 0x545   : > { %v1574_v45 = vpop.f32.mrf.mxu1 }
 0x55f   : > { %v1830_v49 = vpop.f32.mrf.mxu1 }
 0x560   : > { %v1837_v51 = vadd.f32 %v1830_v49, %v1691_v47 }
 0x561   : > { %v1832_v53 = vpop.f32.mrf.mxu1 }
 0x562   : > { %v1851_v54 = vadd.f32 %v1844_v48, %v1837_v51  ;;  %v1838_v55 = vadd.f32 %v1832_v53, %v1693_v50 }
 0x563   : > { %v1834_v57 = vpop.f32.mrf.mxu1 }
 0x564   : > { %v1853_v59 = vmax.f32 %v1851_v54, 0.0  ;;  %v1852_v60 = vadd.f32 %v1848_v52, %v1838_v55 }
 0x565   : > { %v1835_v61 = vpop.f32.mrf.mxu1 }
 0x566   : > { %v1857_v62 = vrot.slane %v1853_v59, 2  ;;  %v1854_v63 = vmax.f32 %v1852_v60, 0.0 }
 0x568   : > { %v1858_v0 = vrot.slane %v1854_v63, 2  ;;  %v1861_v1 = vmax.f32 %v1853_v59, %v1857_v62 }
 0x56a   : > { %v1862_v2 = vmax.f32 %v1854_v63, %v1858_v0 }
 0x56c   : > { %v1863_v3 = vmax.f32 %v1861_v1, %v1862_v2 }
 0x56e   : > { %v1864_v4 = vpack.c.bf16 %v1863_v3, %v1863_v3 }
 0x570   : > { %v1865_v56 = vunpack.c.l.bf16 %v1864_v4 }
 0x572   : > { %v1866_v58 = vsel %vm1374_vm5, %v1865_v56, 0.0 }
 0x573   : > { %v1867_v7 = vrot.slane %v1866_v58, 4 }
 0x575   : > { %v1868_v9 = vadd.f32 %v1867_v7, %v1866_v58 }
 0x577   : > { %v1869_v11 = vrot.slane %v1868_v9, 2 }
 0x579   : > { %v1870_v12 = vadd.f32 %v1869_v11, %v1868_v9 }
 0x57b   : > { %v1871_v13 = vrot.slane %v1870_v12, 1 }
 0x57d   : > { %v1872_v14 = vadd.f32 %v1871_v13, %v1870_v12 }
 0x57f   : > { %1874 = vrot.lane.b32.xlu0 %v1872_v14, %s2791_s22  ;;  %s2056_s22 = sshll.u32 %s501_s29, 4  ;;  %s2057_s22 = int_to_ptr.vmem [resolvable:$true] %s2056_s22 }
 0x580   : > { %s2713_s18 = scalar_lea.vmem %s2057_s22, 16  ;;  %p2720_p8 = scmp.lt.s32.totalorder %s2057_s22, %s2718_s17 }
 0x581   : > { %p2714_p10 = scmp.ne.s32.totalorder %s2057_s22, %s2713_s18  ;;  %p2721_p11 = scmp.lt.s32.totalorder %s2719_s19, %s2713_s18 }
 0x583   : > { %p2715_p12 = pnand %p2714_p10, %p2906_p5  ;;  %p2722_p0 = por %p2721_p11, %p2720_p8 }
 0x585   : > { %p2716_p7 = pneg %p2715_p12 }
 0x587   : > { %p2723_p6 = pnand %p2722_p0, %p2716_p7 }
 0x5f1   : > { %v1875_v15 = vpop.permute.xlu0 %1874 }
 0x5f2   : > { %v1877_v16 = vadd.f32 %v1875_v15, %v1872_v14 }
 0x5f4   : > { %v1878_v18 = vmul.f32 0.25, %v1877_v16 }
 0x5f6   : > { %2372 = vmatmul.mubr.msk.f32.vlgmr.msra.gmra.mxu0 %vm1888_vm7, %v1878_v18 }
 0x6b6   : > { %v1958_v23 = vpop.f32.mrf.mxu0 }
 0x6b7   : > { %v1959_v24 = vadd.f32 %v1958_v23, %v1887_v22 }
 0x6b8   : > { %v2373_v25 = vpop.f32.mrf.mxu0 }
 0x6b9   : > { %v1962_v26 = vmax.f32 %v1959_v24, 0.0 }
 0x6bb   : > { %2383 = vmatmul.mubr.msk.f32.vlgmr.msra.gmra.mxu1 %vm1968_vm8, %v1962_v26 }
 0x77b   : > { %v2038_v33 = vpop.f32.mrf.mxu1 }
 0x77c   : > { %v2039_v28 = vadd.f32 %v2038_v33, %v1967_v27 }
 0x77d   : > { %v2384_v17 = vpop.f32.mrf.mxu1 }
 0x77e   : > { %2042 = vst [vmem:[%s501_s29] sm:$0x1] %v2039_v28 }
 0x77f   : > { %2726 = shalt.err (!%p2723_p6)
}
 0x780   : > { %s2727_s27 = scalar_lea.hbm %s3227_s20, 16  ;;  %s2731_s29 = scalar_lea.hbm %s3276_s14, 32 }
 0x781   : > { %p2728_p9 = scmp.ne.s32.totalorder %s3227_s20, %s2727_s27  ;;  %p2732_p3 = scmp.lt.s32.totalorder %s3227_s20, %s3276_s14 }
 0x782   : > { %p2733_p2 = scmp.lt.s32.totalorder %s2731_s29, %s2727_s27 }
 0x783   : > { %p2729_p1 = pnand %p2728_p9, %p2906_p5 }
 0x784   : > { %p2734_p4 = por %p2733_p2, %p2732_p3 }
 0x785   : > { %p2730_p13 = pneg %p2729_p1 }
 0x787   : > { %p2735_p10 = pnand %p2734_p4, %p2730_p13 }
 0x789   : > { %2738 = shalt.err (!%p2735_p10)
}
 0x78a   : > { %2397 = dma.vmem_to_hbm [thread:$0]  (%p2906_p5), %s2057_s22, 16, %s3227_s20, %s2044_s26  }
 0x78b PF: > { %s3296_s18 = sld [smem:[#allocation12_spill]]  ;;  %p2419_p12 = scmp.ge.s32.totalorder %s2781_s16, 2 }
 0x78c   : > { %s3297_s15 = sld [smem:[#allocation16_spill]] }
 0x791   : > { %s2068_s17 = sand.u32 1, %s3296_s18  }
 0x792   : > { %p3298_p7 = scmp.ne.s32.totalorder %s3297_s15, 0  ;;  %s2069_s19 = scalar_lea.sflag [#allocation4], %s2068_s17 }
 0x794   : > { %p2410_p8 = pnand %p2419_p12, %p3298_p7 }
 0x796   : > { %p2411_p11 = pneg %p2410_p8 }
 0x798   : > { %2764 = dma.done.wait (%p2411_p11), %s2069_s19, 16  }
 0x799   : > { %2766 = vsyncadd (%p2411_p11), %s2069_s19, 4294967280  ;;  %s3299_s16 = sld [smem:[#allocation14_spill]]  ;;  %s3302_s29 = smov %s2773_s30 }
 0x79a   : > { %s3300_s27 = sld [smem:[#allocation13_spill]] }
 0x79b   : > { %s3301_s15 = sld [smem:[#allocation15_spill]] }
 0x79f   : > { %p26_p0 = scmp.ge.s32.totalorder %s3299_s16, 4  }
 0x7a0   : > { %s3303_s30 = smov %s3300_s27 }
 0x7a1   :  { %28 = sbr.rel (!%p26_p0) target bundleno = 5 (0x5), region = 130 }
 0x7a6   :  { %2073 = vsyncpa [#allocation3], 1 }
 0x7a7   :  { %2075 = vsyncpa [#allocation3 + $0x1], 1 }
 0x7a8   :  { %2076 = vsyncpa [#allocation6], 1 }
 0x7a9   :  { %2077 = vsyncpa [#allocation4], 1 }
 0x7aa   :  { %2079 = vsyncpa [#allocation4 + $0x1], 1 }

</bundles_post_ra>
